<compile_context>
chip_gen: v5e
topology: v5e:2x2
jax: 0.10.0
libtpu: 0.0.40
codegen_flags: <defaults>
</compile_context>

<pallas_src>
import jax
import jax.numpy as jnp
from jax.experimental import pallas as pl
from jax.experimental.pallas import tpu as pltpu


NEG_PAD = -1e9  # bias value for padded logit lanes -> exp() underflows to 0


def mlp_softmax_kernel(x_ref, w1_ref, b1_ref, w2_ref, b2_ref, w3_ref, b3_ref,
                       o_ref):
    # ---- Linear(784->512) + ReLU (bf16 MXU inputs, f32 accumulation) ----
    h1 = jnp.dot(x_ref[...], w1_ref[...], preferred_element_type=jnp.float32)
    h1 = jnp.maximum(h1 + b1_ref[...], 0.0)                 # (TM, 512) f32

    # ---- Linear(512->512) + ReLU ----
    h2 = jnp.dot(h1.astype(w2_ref.dtype), w2_ref[...],
                 preferred_element_type=jnp.float32)
    h2 = jnp.maximum(h2 + b2_ref[...], 0.0)                 # (TM, 512) f32

    # ---- Linear(512->10), output padded to 128 lanes ----
    logits = jnp.dot(h2.astype(w3_ref.dtype), w3_ref[...],
                     preferred_element_type=jnp.float32)
    logits = logits + b3_ref[...]                           # (TM, 128) f32
    # lanes 10..127 carry bias NEG_PAD => exp() ~ 0, softmax unchanged

    # ---- softmax(dim=1), numerically stable, divide via EUP reciprocal ----
    m = jnp.max(logits, axis=-1, keepdims=True)
    e = jnp.exp(logits - m)
    denom = jnp.sum(e, axis=-1, keepdims=True)
    o_ref[...] = (e * pl.reciprocal(denom, approx=True)).astype(o_ref.dtype)


def _round_up(x, m):
    return (x + m - 1) // m * m


def fully_connected_relu_net1_forward(x_nchw, params, *, tm=512,
                                      param_dtype=jnp.bfloat16):
    """x_nchw: (B, 1, 28, 28) float32. Returns softmax probabilities (B, 10)."""
    w1, b1, w2, b2, w3, b3 = params
    B = x_nchw.shape[0]
    x = x_nchw.reshape(B, 784).astype(jnp.float32)  # torch view(-1, 784)

    # Pad feature dim 784 -> 896 (7*128). Zero columns of x match zero rows
    # appended to w1, so the matmul result is unchanged.
    K1 = 896
    x = jnp.pad(x, ((0, 0), (0, K1 - 784)))
    w1p = jnp.pad(w1.astype(jnp.float32), ((0, K1 - 784), (0, 0)))

    # Pad the 10-class output to 128 lanes: zero weight columns plus a very
    # negative bias so the padded classes get ~0 probability.
    NOUT = 128
    w3p = jnp.pad(w3.astype(jnp.float32), ((0, 0), (0, NOUT - 10)))
    b3p = jnp.pad(b3.astype(jnp.float32), ((0, 0), (0, NOUT - 10)),
                  constant_values=NEG_PAD)

    # Batch tiling: TM multiple of 8, batch zero-padded to a TM multiple.
    tm = min(tm, _round_up(B, 8))
    Bp = _round_up(B, tm)
    if Bp != B:
        x = jnp.pad(x, ((0, Bp - B), (0, 0)))

    # bf16 MXU operands; biases stay f32 (added to the f32 accumulator).
    x = x.astype(param_dtype)
    w1c = w1p.astype(param_dtype)
    w2c = w2.astype(param_dtype)
    w3c = w3p.astype(param_dtype)
    b1c = b1.astype(jnp.float32)
    b2c = b2.astype(jnp.float32)
    b3c = b3p

    grid = (Bp // tm,)
    const = lambda i: (0, 0)   # weights/biases: same block every grid step

    out = pl.pallas_call(
        mlp_softmax_kernel,
        out_shape=jax.ShapeDtypeStruct((Bp, NOUT), jnp.float32),
        grid_spec=pltpu.PrefetchScalarGridSpec(
            num_scalar_prefetch=0,
            grid=grid,
            in_specs=[
                pl.BlockSpec((tm, K1), lambda i: (i, 0)),     # x streams
                pl.BlockSpec((K1, 512), const),               # w1 resident
                pl.BlockSpec((1, 512), const),                # b1
                pl.BlockSpec((512, 512), const),              # w2 resident
                pl.BlockSpec((1, 512), const),                # b2
                pl.BlockSpec((512, NOUT), const),             # w3 resident (padded)
                pl.BlockSpec((1, NOUT), const),               # b3 (padded)
            ],
            out_specs=pl.BlockSpec((tm, NOUT), lambda i: (i, 0)),  # lane-dense
        ),
        compiler_params=pltpu.CompilerParams(
            dimension_semantics=("parallel",),   # v7x: shard tiles across TCs
            vmem_limit_bytes=48 << 20,           # under v7x 64 MiB physical
        ),
    )(x, w1c, b1c, w2c, b2c, w3c, b3c)

    return out[:B, :10]


def init_params(key):
    """Deterministic synthetic parameters matching nn.Linear shapes.
    PyTorch stores W as (out, in); here weights are kept as (in, out)."""
    k1, k2, k3, k4, k5, k6 = jax.random.split(key, 6)
    s1 = 1.0 / jnp.sqrt(784.0)
    s2 = 1.0 / jnp.sqrt(512.0)
    w1 = jax.random.uniform(k1, (784, 512), jnp.float32, -s1, s1)
    b1 = jax.random.uniform(k2, (1, 512), jnp.float32, -s1, s1)
    w2 = jax.random.uniform(k3, (512, 512), jnp.float32, -s2, s2)
    b2 = jax.random.uniform(k4, (1, 512), jnp.float32, -s2, s2)
    w3 = jax.random.uniform(k5, (512, 10), jnp.float32, -s2, s2)
    b3 = jax.random.uniform(k6, (1, 10), jnp.float32, -s2, s2)
    return (w1, b1, w2, b2, w3, b3)


def reference_forward(x_nchw, params, param_dtype=jnp.bfloat16):
    """Pure-JAX reference using the same bf16 operand / f32 accumulate recipe."""
    w1, b1, w2, b2, w3, b3 = params
    x = x_nchw.reshape(x_nchw.shape[0], 784).astype(param_dtype)
    h1 = jnp.maximum(
        jnp.dot(x, w1.astype(param_dtype),
                preferred_element_type=jnp.float32) + b1, 0.0)
    h2 = jnp.maximum(
        jnp.dot(h1.astype(param_dtype), w2.astype(param_dtype),
                preferred_element_type=jnp.float32) + b2, 0.0)
    logits = jnp.dot(h2.astype(param_dtype), w3.astype(param_dtype),
                     preferred_element_type=jnp.float32) + b3
    return jax.nn.softmax(logits, axis=-1)


if __name__ == "__main__":
    key = jax.random.PRNGKey(0)
    kx, kp = jax.random.split(key)

    B = 8
    x = jax.random.normal(kx, (B, 1, 28, 28), jnp.float32)  # NCHW -> 784
    params = init_params(kp)

    probs = fully_connected_relu_net1_forward(x, params)
    probs = jax.block_until_ready(probs)

    # sanity: shape, softmax rows sum to ~1, matches pure-JAX reference
    assert probs.shape == (B, 10)
    row_sums = jnp.sum(probs, axis=1)
    assert bool(jnp.all(jnp.abs(row_sums - 1.0) < 5e-3))

    ref = reference_forward(x, params)
    assert bool(jnp.all(jnp.abs(probs - ref) < 2e-2))

    print("KERNEL_OK")
</pallas_src>

<mosaic_0001>
module attributes {stable_mosaic.version = 11 : i64} {
  func.func @mlp_softmax_kernel(%arg0: i32, %arg1: memref<8x896xbf16, #tpu.memory_space<vmem>>, %arg2: memref<896x512xbf16, #tpu.memory_space<vmem>>, %arg3: memref<1x512xf32, #tpu.memory_space<vmem>>, %arg4: memref<512x512xbf16, #tpu.memory_space<vmem>>, %arg5: memref<1x512xf32, #tpu.memory_space<vmem>>, %arg6: memref<512x128xbf16, #tpu.memory_space<vmem>>, %arg7: memref<1x128xf32, #tpu.memory_space<vmem>>, %arg8: memref<8x128xf32, #tpu.memory_space<vmem>>) attributes {dimension_semantics = [#tpu.dimension_semantics<parallel>], iteration_bounds = array<i64: 1>, scalar_prefetch = 0 : i64, scratch_operands = 0 : i64, tpu.core_type = #tpu.core_type<tc>, window_params = [{transform_indices = @transform_0, window_bounds = array<i64: 8, 896>}, {pipeline_mode = #tpu.pipeline_mode<synchronous>, transform_indices = @transform_1, window_bounds = array<i64: 896, 512>}, {pipeline_mode = #tpu.pipeline_mode<synchronous>, transform_indices = @transform_2, window_bounds = array<i64: 1, 512>}, {pipeline_mode = #tpu.pipeline_mode<synchronous>, transform_indices = @transform_3, window_bounds = array<i64: 512, 512>}, {pipeline_mode = #tpu.pipeline_mode<synchronous>, transform_indices = @transform_4, window_bounds = array<i64: 1, 512>}, {pipeline_mode = #tpu.pipeline_mode<synchronous>, transform_indices = @transform_5, window_bounds = array<i64: 512, 128>}, {pipeline_mode = #tpu.pipeline_mode<synchronous>, transform_indices = @transform_6, window_bounds = array<i64: 1, 128>}, {transform_indices = @transform_7, window_bounds = array<i64: 8, 128>}]} {
    %c0 = arith.constant 0 : index
    %c0_0 = arith.constant 0 : index
    %0 = vector.load %arg1[%c0, %c0_0] : memref<8x896xbf16, #tpu.memory_space<vmem>>, vector<8x896xbf16>
    %c0_1 = arith.constant 0 : index
    %c0_2 = arith.constant 0 : index
    %1 = vector.load %arg2[%c0_1, %c0_2] : memref<896x512xbf16, #tpu.memory_space<vmem>>, vector<896x512xbf16>
    %cst = arith.constant dense<0.000000e+00> : vector<8x512xf32>
    %2 = tpu.matmul %0, %1, %cst {dimension_numbers = #tpu.dot_dimension_numbers<[1], [0], [0], [1], [0, 0, 1, 1], [], []>} : vector<8x896xbf16>, vector<896x512xbf16>, vector<8x512xf32> -> vector<8x512xf32>
    %c0_3 = arith.constant 0 : index
    %c0_4 = arith.constant 0 : index
    %3 = vector.load %arg3[%c0_3, %c0_4] : memref<1x512xf32, #tpu.memory_space<vmem>>, vector<1x512xf32>
    %4 = vector.broadcast %3 : vector<1x512xf32> to vector<8x512xf32>
    %5 = arith.addf %2, %4 : vector<8x512xf32>
    %cst_5 = arith.constant 0.000000e+00 : f32
    %6 = vector.broadcast %cst_5 : f32 to vector<8x512xf32>
    %7 = arith.maximumf %5, %6 : vector<8x512xf32>
    %8 = arith.truncf %7 : vector<8x512xf32> to vector<8x512xbf16>
    %c0_6 = arith.constant 0 : index
    %c0_7 = arith.constant 0 : index
    %9 = vector.load %arg4[%c0_6, %c0_7] : memref<512x512xbf16, #tpu.memory_space<vmem>>, vector<512x512xbf16>
    %cst_8 = arith.constant dense<0.000000e+00> : vector<8x512xf32>
    %10 = tpu.matmul %8, %9, %cst_8 {dimension_numbers = #tpu.dot_dimension_numbers<[1], [0], [0], [1], [0, 0, 1, 1], [], []>} : vector<8x512xbf16>, vector<512x512xbf16>, vector<8x512xf32> -> vector<8x512xf32>
    %c0_9 = arith.constant 0 : index
    %c0_10 = arith.constant 0 : index
    %11 = vector.load %arg5[%c0_9, %c0_10] : memref<1x512xf32, #tpu.memory_space<vmem>>, vector<1x512xf32>
    %12 = vector.broadcast %11 : vector<1x512xf32> to vector<8x512xf32>
    %13 = arith.addf %10, %12 : vector<8x512xf32>
    %cst_11 = arith.constant 0.000000e+00 : f32
    %14 = vector.broadcast %cst_11 : f32 to vector<8x512xf32>
    %15 = arith.maximumf %13, %14 : vector<8x512xf32>
    %16 = arith.truncf %15 : vector<8x512xf32> to vector<8x512xbf16>
    %c0_12 = arith.constant 0 : index
    %c0_13 = arith.constant 0 : index
    %17 = vector.load %arg6[%c0_12, %c0_13] : memref<512x128xbf16, #tpu.memory_space<vmem>>, vector<512x128xbf16>
    %cst_14 = arith.constant dense<0.000000e+00> : vector<8x128xf32>
    %18 = tpu.matmul %16, %17, %cst_14 {dimension_numbers = #tpu.dot_dimension_numbers<[1], [0], [0], [1], [0, 0, 1, 1], [], []>} : vector<8x512xbf16>, vector<512x128xbf16>, vector<8x128xf32> -> vector<8x128xf32>
    %c0_15 = arith.constant 0 : index
    %c0_16 = arith.constant 0 : index
    %19 = vector.load %arg7[%c0_15, %c0_16] : memref<1x128xf32, #tpu.memory_space<vmem>>, vector<1x128xf32>
    %20 = vector.broadcast %19 : vector<1x128xf32> to vector<8x128xf32>
    %21 = arith.addf %18, %20 : vector<8x128xf32>
    %cst_17 = arith.constant dense<0xFF800000> : vector<8xf32>
    %22 = vector.multi_reduction <maximumf>, %21, %cst_17 [1] : vector<8x128xf32> to vector<8xf32>
    %23 = vector.shape_cast %22 : vector<8xf32> to vector<8x1xf32>
    %24 = vector.broadcast %23 : vector<8x1xf32> to vector<8x128xf32>
    %25 = arith.subf %21, %24 : vector<8x128xf32>
    %26 = math.exp %25 : vector<8x128xf32>
    %cst_18 = arith.constant dense<0.000000e+00> : vector<8xf32>
    %27 = vector.multi_reduction <add>, %26, %cst_18 [1] : vector<8x128xf32> to vector<8xf32>
    %28 = vector.shape_cast %27 : vector<8xf32> to vector<8x1xf32>
    %29 = tpu.reciprocal %28 {approx = true} : vector<8x1xf32> -> vector<8x1xf32>
    %30 = vector.broadcast %29 : vector<8x1xf32> to vector<8x128xf32>
    %31 = arith.mulf %26, %30 : vector<8x128xf32>
    %c0_19 = arith.constant 0 : index
    %c0_20 = arith.constant 0 : index
    %32 = vector.load %arg8[%c0_19, %c0_20] : memref<8x128xf32, #tpu.memory_space<vmem>>, vector<8x128xf32>
    tpu.vector_store %arg8[%c0_19, %c0_20], %31 {strides = array<i32>} : memref<8x128xf32, #tpu.memory_space<vmem>>, vector<8x128xf32>,
    return
  }
  func.func @transform_0(%arg0: i32) -> (i32, i32) {
    %c0_i32 = arith.constant 0 : i32
    %c0_i32_0 = arith.constant 0 : i32
    return %arg0, %c0_i32 : i32, i32
  }
  func.func @transform_1(%arg0: i32) -> (i32, i32) {
    %c0_i32 = arith.constant 0 : i32
    %c0_i32_0 = arith.constant 0 : i32
    %c0_i32_1 = arith.constant 0 : i32
    return %c0_i32, %c0_i32_0 : i32, i32
  }
  func.func @transform_2(%arg0: i32) -> (i32, i32) {
    %c0_i32 = arith.constant 0 : i32
    %c0_i32_0 = arith.constant 0 : i32
    %c0_i32_1 = arith.constant 0 : i32
    return %c0_i32, %c0_i32_0 : i32, i32
  }
  func.func @transform_3(%arg0: i32) -> (i32, i32) {
    %c0_i32 = arith.constant 0 : i32
    %c0_i32_0 = arith.constant 0 : i32
    %c0_i32_1 = arith.constant 0 : i32
    return %c0_i32, %c0_i32_0 : i32, i32
  }
  func.func @transform_4(%arg0: i32) -> (i32, i32) {
    %c0_i32 = arith.constant 0 : i32
    %c0_i32_0 = arith.constant 0 : i32
    %c0_i32_1 = arith.constant 0 : i32
    return %c0_i32, %c0_i32_0 : i32, i32
  }
  func.func @transform_5(%arg0: i32) -> (i32, i32) {
    %c0_i32 = arith.constant 0 : i32
    %c0_i32_0 = arith.constant 0 : i32
    %c0_i32_1 = arith.constant 0 : i32
    return %c0_i32, %c0_i32_0 : i32, i32
  }
  func.func @transform_6(%arg0: i32) -> (i32, i32) {
    %c0_i32 = arith.constant 0 : i32
    %c0_i32_0 = arith.constant 0 : i32
    %c0_i32_1 = arith.constant 0 : i32
    return %c0_i32, %c0_i32_0 : i32, i32
  }
  func.func @transform_7(%arg0: i32) -> (i32, i32) {
    %c0_i32 = arith.constant 0 : i32
    %c0_i32_0 = arith.constant 0 : i32
    return %arg0, %c0_i32 : i32, i32
  }
}

</mosaic_0001>

<bundles_post_ra>
// kernel: tpu_custom_call.1
= control target key start
LH: loop header
LB: loop body
LE: loop exit
PB: predicated region body
PF: predicated region fallthrough
CT: control target
= control target key end

     0   :  { %12 = vsyncpa [#allocation3], 0  ;;  %s5539_s0 = inlined_call_operand.hbm [shape: bf16[8,896], index: 0, kind: input, shape index: {}]   ;;  %s5540_s1 = inlined_call_operand.hbm [shape: bf16[896,512], index: 1, kind: input, shape index: {}]   ;;  %s5541_s2 = inlined_call_operand.hbm [shape: f32[1,512], index: 2, kind: input, shape index: {}]   ;;  %s5542_s3 = inlined_call_operand.hbm [shape: bf16[512,512], index: 3, kind: input, shape index: {}]   ;;  %s5543_s4 = inlined_call_operand.hbm [shape: f32[1,512], index: 4, kind: input, shape index: {}]   ;;  %s5544_s5 = inlined_call_operand.hbm [shape: bf16[512,128], index: 5, kind: input, shape index: {}]   ;;  %s5545_s6 = inlined_call_operand.vmem [shape: f32[1,128], index: 6, kind: input, shape index: {}]   ;;  %s5546_s7 = inlined_call_operand.hbm [shape: f32[8,128], index: 7, kind: output, shape index: {}]  }
   0x1   :  { %13 = vsyncpa [#allocation6], 0 }
   0x2   :  { %14 = vsyncpa [#allocation9], 0 }
   0x3   :  { %15 = vsyncpa [#allocation12], 0  ;;  %s32_s26 = sshll.u32 %s5540_s1, 4  ;;  %s33_s26 = int_to_ptr.hbm [resolvable:$true] %s32_s26 }
   0x4   :  { %16 = vsyncpa [#allocation4], 0  ;;  %s5321_s27 = smov [#allocation5]   ;;  %s56_s8 = sshll.u32 %s5542_s3, 4  ;;  %s57_s8 = int_to_ptr.hbm [resolvable:$true] %s56_s8 }
   0x5   :  { %s34_s28 = sshll.u32 %s5321_s27, 4  ;;  %s5322_s9 = smov 256   ;;  %s35_s28 = int_to_ptr.vmem [resolvable:$true] %s34_s28 }
   0x6   :  { %s5323_s10 = smov 16   ;;  %s5324_s11 = smov [#allocation8]  }
   0x7   :  { %40 = dma.hbm_to_vmem [thread:$0]  %s33_s26, 28672, %s35_s28, [#allocation6], %s5322_s9, %s5322_s9, %s5323_s10  }
   0x8   :  { %s58_s12 = sshll.u32 %s5324_s11, 4  ;;  %s22_s15 = sshll.u32 %s5539_s0, 4  ;;  %s59_s12 = int_to_ptr.vmem [resolvable:$true] %s58_s12  ;;  %s23_s15 = int_to_ptr.hbm [resolvable:$true] %s22_s15 }
   0x9   :  { %64 = dma.hbm_to_vmem [thread:$0]  %s57_s8, 16384, %s59_s12, [#allocation9], %s5322_s9, %s5322_s9, %s5323_s10  }
   0xa   :  { %s46_s17 = sshll.u32 %s5541_s2, 4  ;;  %s5325_s18 = smov [#allocation2]   ;;  %s47_s17 = int_to_ptr.hbm [resolvable:$true] %s46_s17 }
   0xb   :  { %s24_s19 = sshll.u32 %s5325_s18, 4  ;;  %s5326_s3 = smov [#allocation7]   ;;  %s25_s19 = int_to_ptr.vmem [resolvable:$true] %s24_s19 }
   0xc   :  { %27 = dma.hbm_to_vmem [thread:$0]  %s23_s15, 448, %s25_s19, [#allocation3]  }
   0xd   :  { %s48_s20 = sshll.u32 %s5326_s3, 4  ;;  %s70_s23 = sshll.u32 %s5543_s4, 4  ;;  %s49_s20 = int_to_ptr.vmem [resolvable:$true] %s48_s20  ;;  %s71_s23 = int_to_ptr.hbm [resolvable:$true] %s70_s23 }
   0xe   :  { %51 = dma.hbm_to_vmem [thread:$0]  %s47_s17, 64, %s49_s20, [#allocation6]  }
   0xf   :  { %s80_s25 = sshll.u32 %s5544_s5, 4  ;;  %s5327_s26 = smov [#allocation10]   ;;  %s81_s25 = int_to_ptr.hbm [resolvable:$true] %s80_s25 }
  0x10   :  { %s72_s2 = sshll.u32 %s5327_s26, 4  ;;  %s5328_s27 = smov [#allocation11]   ;;  %s73_s2 = int_to_ptr.vmem [resolvable:$true] %s72_s2 }
  0x11   :  { %75 = dma.hbm_to_vmem [thread:$0]  %s71_s23, 64, %s73_s2, [#allocation9]  }
  0x12   :  { %s82_s28 = sshll.u32 %s5328_s27, 4  ;;  %s5329_s29 = smov 64   ;;  %s83_s28 = int_to_ptr.vmem [resolvable:$true] %s82_s28 }
  0x13   :  { %s5330_s30 = smov 4  }
  0x14   :  { %88 = dma.hbm_to_vmem [thread:$0]  %s81_s25, 4096, %s83_s28, [#allocation12], %s5329_s29, %s5329_s29, %s5330_s30  }
  0x15   :  { %5311 = dma.done.wait [#allocation3], 448  }
  0x16   :  { %5312 = vsyncadd [#allocation3], 4294966848 }
  0x17   :  { %5313 = dma.done.wait [#allocation6], 28736  }
  0x18   :  { %5314 = vsyncadd [#allocation6], 4294938560 }
  0x19   :  { %5315 = dma.done.wait [#allocation9], 16448  }
  0x1a   :  { %5316 = vsyncadd [#allocation9], 4294950848 }
  0x1b   :  { %5317 = dma.done.wait [#allocation12], 4096  }
  0x1c   :  { %5318 = vsyncadd [#allocation12], 4294963200  ;;  %v3320_v0 = vld [vmem:[#allocation5 + $0xe0] sm:$0xf]  ;;  %v4772_v1 = vld [vmem:[#allocation5 + $0xec] sm:$0xf0] }
  0x1d   :  { %v3448_v2 = vld [vmem:[#allocation5 + $0x1e0] sm:$0xf]  ;;  %v3321_v3 = vor.u32 %v4772_v1, %v3320_v0  ;;  %v4804_v4 = vld [vmem:[#allocation5 + $0x1ec] sm:$0xf0]  ;;  %s5331_s8 = smov [#allocation13]  }
  0x1e   :  { %v3576_v5 = vld [vmem:[#allocation5 + $0x2e0] sm:$0xf]  ;;  %v4836_v6 = vld [vmem:[#allocation5 + $0x2ec] sm:$0xf0]  ;;  %v3449_v7 = vor.u32 %v4804_v4, %v3448_v2  ;;  %s3191_s9 = sshll.u32 %s5331_s8, 4  ;;  %s3192_s9 = int_to_ptr.vmem [resolvable:$true] %s3191_s9 }
  0x1f   :  { %v3577_v8 = vor.u32 %v4836_v6, %v3576_v5  ;;  %v3704_v9 = vld [vmem:[#allocation5 + $0x3e0] sm:$0xf]  ;;  %v4868_v10 = vld [vmem:[#allocation5 + $0x3ec] sm:$0xf0]  ;;  %1498 = vmatpush.bf16.msra.mxu0 %v3321_v3 }
  0x20   :  { %v3304_v11 = vld [vmem:[#allocation5 + $0xc0] sm:$0xf]  ;;  %v3705_v12 = vor.u32 %v4868_v10, %v3704_v9  ;;  %v4768_v13 = vld [vmem:[#allocation5 + $0xcc] sm:$0xf0]  ;;  %1511 = vmatpush.bf16.msra.mxu1 %v3449_v7 }
  0x21   :  { %v3432_v14 = vld [vmem:[#allocation5 + $0x1c0] sm:$0xf]  ;;  %v4800_v15 = vld [vmem:[#allocation5 + $0x1cc] sm:$0xf0]  ;;  %1524 = vmatpush.bf16.msra.mxu2 %v3577_v8  ;;  %v3305_v16 = vor.u32 %v4768_v13, %v3304_v11 }
  0x22   :  { %v3433_v17 = vor.u32 %v4800_v15, %v3432_v14  ;;  %v3560_v18 = vld [vmem:[#allocation5 + $0x2c0] sm:$0xf]  ;;  %v4832_v19 = vld [vmem:[#allocation5 + $0x2cc] sm:$0xf0]  ;;  %1537 = vmatpush.bf16.msra.mxu3 %v3705_v12 }
  0x23   :  { %v3688_v20 = vld [vmem:[#allocation5 + $0x3c0] sm:$0xf]  ;;  %v3561_v21 = vor.u32 %v4832_v19, %v3560_v18  ;;  %v4864_v22 = vld [vmem:[#allocation5 + $0x3cc] sm:$0xf0]  ;;  %1499 = vmatpush.bf16.msra.mxu0 %v3305_v16 }
  0x24   :  { %v3288_v23 = vld [vmem:[#allocation5 + $0xa0] sm:$0xf]  ;;  %v4764_v24 = vld [vmem:[#allocation5 + $0xac] sm:$0xf0]  ;;  %v3689_v25 = vor.u32 %v4864_v22, %v3688_v20  ;;  %1512 = vmatpush.bf16.msra.mxu1 %v3433_v17 }
  0x25   :  { %v3416_v26 = vld [vmem:[#allocation5 + $0x1a0] sm:$0xf]  ;;  %v4796_v27 = vld [vmem:[#allocation5 + $0x1ac] sm:$0xf0]  ;;  %v3289_v29 = vor.u32 %v4764_v24, %v3288_v23  ;;  %1525 = vmatpush.bf16.msra.mxu2 %v3561_v21 }
  0x26   :  { %v3544_v28 = vld [vmem:[#allocation5 + $0x2a0] sm:$0xf]  ;;  %v4828_v30 = vld [vmem:[#allocation5 + $0x2ac] sm:$0xf0]  ;;  %v3417_v33 = vor.u32 %v4796_v27, %v3416_v26  ;;  %1538 = vmatpush.bf16.msra.mxu3 %v3689_v25 }
  0x27   :  { %v3672_v31 = vld [vmem:[#allocation5 + $0x3a0] sm:$0xf]  ;;  %v4860_v32 = vld [vmem:[#allocation5 + $0x3ac] sm:$0xf0]  ;;  %v3545_v34 = vor.u32 %v4828_v30, %v3544_v28  ;;  %1500 = vmatpush.bf16.msra.mxu0 %v3289_v29 }
  0x28   :  { %v3272_v35 = vld [vmem:[#allocation5 + $0x80] sm:$0xf]  ;;  %v4760_v36 = vld [vmem:[#allocation5 + $0x8c] sm:$0xf0]  ;;  %v3673_v38 = vor.u32 %v4860_v32, %v3672_v31  ;;  %1513 = vmatpush.bf16.msra.mxu1 %v3417_v33 }
  0x29   :  { %v3400_v37 = vld [vmem:[#allocation5 + $0x180] sm:$0xf]  ;;  %v4792_v39 = vld [vmem:[#allocation5 + $0x18c] sm:$0xf0]  ;;  %v3273_v44 = vor.u32 %v4760_v36, %v3272_v35  ;;  %1526 = vmatpush.bf16.msra.mxu2 %v3545_v34 }
  0x2a   :  { %v3528_v40 = vld [vmem:[#allocation5 + $0x280] sm:$0xf]  ;;  %v4824_v41 = vld [vmem:[#allocation5 + $0x28c] sm:$0xf0]  ;;  %v3401_v45 = vor.u32 %v4792_v39, %v3400_v37  ;;  %1539 = vmatpush.bf16.msra.mxu3 %v3673_v38  ;;  %v4770_v37 = vld [vmem:[#allocation5 + $0xe4] sm:$0xf] }
  0x2b   :  { %v3656_v42 = vld [vmem:[#allocation5 + $0x380] sm:$0xf]  ;;  %v4856_v43 = vld [vmem:[#allocation5 + $0x38c] sm:$0xf0]  ;;  %v3529_v46 = vor.u32 %v4824_v41, %v3528_v40  ;;  %1501 = vmatpush.bf16.msra.mxu0 %v3273_v44  ;;  %v3322_v38 = vld [vmem:[#allocation5 + $0xf0] sm:$0xf0] }
  0x2c   :  { %v3256_v47 = vld [vmem:[#allocation5 + $0x60] sm:$0xf]  ;;  %v4756_v48 = vld [vmem:[#allocation5 + $0x6c] sm:$0xf0]  ;;  %v3657_v50 = vor.u32 %v4856_v43, %v3656_v42  ;;  %1514 = vmatpush.bf16.msra.mxu1 %v3401_v45 }
  0x2d   :  { %v3384_v49 = vld [vmem:[#allocation5 + $0x160] sm:$0xf]  ;;  %v4788_v51 = vld [vmem:[#allocation5 + $0x16c] sm:$0xf0]  ;;  %v3257_v56 = vor.u32 %v4756_v48, %v3256_v47  ;;  %1527 = vmatpush.bf16.msra.mxu2 %v3529_v46  ;;  %v3325_v46 = vor.u32 %v4770_v37, %v3322_v38 }
  0x2e   :  { %v3512_v52 = vld [vmem:[#allocation5 + $0x260] sm:$0xf]  ;;  %v4820_v53 = vld [vmem:[#allocation5 + $0x26c] sm:$0xf0]  ;;  %v3385_v57 = vor.u32 %v4788_v51, %v3384_v49  ;;  %1540 = vmatpush.bf16.msra.mxu3 %v3657_v50  ;;  %v4766_v50 = vld [vmem:[#allocation5 + $0xc4] sm:$0xf] }
  0x2f   :  { %v3640_v54 = vld [vmem:[#allocation5 + $0x360] sm:$0xf]  ;;  %v4852_v55 = vld [vmem:[#allocation5 + $0x36c] sm:$0xf0]  ;;  %v3513_v58 = vor.u32 %v4820_v53, %v3512_v52  ;;  %1502 = vmatpush.bf16.msra.mxu0 %v3257_v56  ;;  %v3306_v51 = vld [vmem:[#allocation5 + $0xd0] sm:$0xf0] }
  0x30   :  { %v3240_v59 = vld [vmem:[#allocation5 + $0x40] sm:$0xf]  ;;  %v4752_v60 = vld [vmem:[#allocation5 + $0x4c] sm:$0xf0]  ;;  %v3641_v62 = vor.u32 %v4852_v55, %v3640_v54  ;;  %1515 = vmatpush.bf16.msra.mxu1 %v3385_v57 }
  0x31   :  { %v3368_v61 = vld [vmem:[#allocation5 + $0x140] sm:$0xf]  ;;  %v4784_v63 = vld [vmem:[#allocation5 + $0x14c] sm:$0xf0]  ;;  %v3241_v4 = vor.u32 %v4752_v60, %v3240_v59  ;;  %1528 = vmatpush.bf16.msra.mxu2 %v3513_v58  ;;  %v3309_v59 = vor.u32 %v4766_v50, %v3306_v51 }
  0x32   :  { %v3496_v0 = vld [vmem:[#allocation5 + $0x240] sm:$0xf]  ;;  %v4816_v1 = vld [vmem:[#allocation5 + $0x24c] sm:$0xf0]  ;;  %v3369_v5 = vor.u32 %v4784_v63, %v3368_v61  ;;  %1541 = vmatpush.bf16.msra.mxu3 %v3641_v62  ;;  %v4762_v62 = vld [vmem:[#allocation5 + $0xa4] sm:$0xf] }
  0x33   :  { %v3624_v2 = vld [vmem:[#allocation5 + $0x340] sm:$0xf]  ;;  %v4848_v3 = vld [vmem:[#allocation5 + $0x34c] sm:$0xf0]  ;;  %v3497_v6 = vor.u32 %v4816_v1, %v3496_v0  ;;  %1503 = vmatpush.bf16.msra.mxu0 %v3241_v4  ;;  %v3290_v63 = vld [vmem:[#allocation5 + $0xb0] sm:$0xf0] }
  0x34   :  { %v3224_v7 = vld [vmem:[#allocation5 + $0x20] sm:$0xf]  ;;  %v4748_v8 = vld [vmem:[#allocation5 + $0x2c] sm:$0xf0]  ;;  %v3625_v10 = vor.u32 %v4848_v3, %v3624_v2  ;;  %1516 = vmatpush.bf16.msra.mxu1 %v3369_v5  ;;  %v115_v3 = vld [vmem:[#allocation2] sm:$0xff] }
  0x35   :  { %v3352_v9 = vld [vmem:[#allocation5 + $0x120] sm:$0xf]  ;;  %v4780_v11 = vld [vmem:[#allocation5 + $0x12c] sm:$0xf0]  ;;  %v3225_v16 = vor.u32 %v4748_v8, %v3224_v7  ;;  %1529 = vmatpush.bf16.msra.mxu2 %v3497_v6 }
  0x36   :  { %v3480_v12 = vld [vmem:[#allocation5 + $0x220] sm:$0xf]  ;;  %v4812_v13 = vld [vmem:[#allocation5 + $0x22c] sm:$0xf0]  ;;  %v3353_v19 = vor.u32 %v4780_v11, %v3352_v9  ;;  %1542 = vmatpush.bf16.msra.mxu3 %v3625_v10  ;;  %v357_v9 = vunpack.c.l.b16 %v115_v3  ;;  %v3293_v11 = vor.u32 %v4762_v62, %v3290_v63 }
  0x37   :  { %v3608_v14 = vld [vmem:[#allocation5 + $0x320] sm:$0xf]  ;;  %v4844_v15 = vld [vmem:[#allocation5 + $0x32c] sm:$0xf0]  ;;  %v3481_v20 = vor.u32 %v4812_v13, %v3480_v12  ;;  %1504 = vmatpush.bf16.msra.mxu0 %v3225_v16  ;;  %v4758_v16 = vld [vmem:[#allocation5 + $0x84] sm:$0xf] }
  0x38   :  { %v3208_v17 = vld [vmem:[#allocation5] sm:$0xf]  ;;  %v4744_v18 = vld [vmem:[#allocation5 + $0xc] sm:$0xf0]  ;;  %v3609_v24 = vor.u32 %v4844_v15, %v3608_v14  ;;  %1517 = vmatpush.bf16.msra.mxu1 %v3353_v19  ;;  %v358_v15 = vunpack.c.h.b16 %v115_v3  ;;  %v5392_v19 = vpack.c.b16 %v357_v9, %v357_v9  ;;  %v118_v3 = vld [vmem:[#allocation2 + $0x18] sm:$0xf] }
  0x39   :  { %v3336_v21 = vld [vmem:[#allocation5 + $0x100] sm:$0xf]  ;;  %v4776_v22 = vld [vmem:[#allocation5 + $0x10c] sm:$0xf0]  ;;  %v3209_v31 = vor.u32 %v4744_v18, %v3208_v17  ;;  %1530 = vmatpush.bf16.msra.mxu2 %v3481_v20  ;;  %v3274_v17 = vld [vmem:[#allocation5 + $0x90] sm:$0xf0] }
  0x3a   :  { %v3464_v23 = vld [vmem:[#allocation5 + $0x200] sm:$0xf]  ;;  %v4808_v25 = vld [vmem:[#allocation5 + $0x20c] sm:$0xf0]  ;;  %v3337_v35 = vor.u32 %v4776_v22, %v3336_v21  ;;  %1543 = vmatpush.bf16.msra.mxu3 %v3609_v24  ;;  %v5396_v22 = vpack.c.b16 %v358_v15, %v358_v15  ;;  %v3450_v9 = vld [vmem:[#allocation5 + $0x1f0] sm:$0xf0]  ;;  %v363_v15 = vunpack.c.l.b16 %v118_v3 }
  0x3b   :  { %v3592_v26 = vld [vmem:[#allocation5 + $0x300] sm:$0xf]  ;;  %v4840_v27 = vld [vmem:[#allocation5 + $0x30c] sm:$0xf0]  ;;  %v3465_v36 = vor.u32 %v4808_v25, %v3464_v23  ;;  %1505 = vmatpush.bf16.msra.mxu0 %v3209_v31 }
  0x3c   :  { %v3832_v28 = vld [vmem:[#allocation5 + $0x4e0] sm:$0xf]  ;;  %v4900_v29 = vld [vmem:[#allocation5 + $0x4ec] sm:$0xf0]  ;;  %v3593_v39 = vor.u32 %v4840_v27, %v3592_v26  ;;  %1518 = vmatpush.bf16.msra.mxu1 %v3337_v35 }
  0x3d   :  { %v3960_v30 = vld [vmem:[#allocation5 + $0x5e0] sm:$0xf]  ;;  %v4932_v32 = vld [vmem:[#allocation5 + $0x5ec] sm:$0xf0]  ;;  %v3833_v40 = vor.u32 %v4900_v29, %v3832_v28  ;;  %1531 = vmatpush.bf16.msra.mxu2 %v3465_v36  ;;  %v3277_v28 = vor.u32 %v4758_v16, %v3274_v17 }
  0x3e   :  { %v4088_v33 = vld [vmem:[#allocation5 + $0x6e0] sm:$0xf]  ;;  %v4964_v34 = vld [vmem:[#allocation5 + $0x6ec] sm:$0xf0]  ;;  %v3961_v41 = vor.u32 %v4932_v32, %v3960_v30  ;;  %1544 = vmatpush.bf16.msra.mxu3 %v3593_v39  ;;  %v4754_v32 = vld [vmem:[#allocation5 + $0x64] sm:$0xf]  ;;  %1506 = vmatmul.bf16.vlgmr.msra.gmra.mxu0 %v5392_v19 }
  0x3f   :  { %v4089_v42 = vor.u32 %v4964_v34, %v4088_v33  ;;  %v3816_v43 = vld [vmem:[#allocation5 + $0x4c0] sm:$0xf]  ;;  %v4896_v44 = vld [vmem:[#allocation5 + $0x4cc] sm:$0xf0]  ;;  %1550 = vmatpush.bf16.msrb.mxu0 %v3833_v40  ;;  %v3258_v33 = vld [vmem:[#allocation5 + $0x70] sm:$0xf0]  ;;  %1519 = vmatmul.bf16.vlgmr.msra.gmra.mxu1 %v5396_v22 }
  0x40   :  { %v3944_v45 = vld [vmem:[#allocation5 + $0x5c0] sm:$0xf]  ;;  %v4928_v47 = vld [vmem:[#allocation5 + $0x5cc] sm:$0xf0]  ;;  %v3817_v52 = vor.u32 %v4896_v44, %v3816_v43  ;;  %1563 = vmatpush.bf16.msrb.mxu1 %v3961_v41  ;;  %v3261_v40 = vor.u32 %v4754_v32, %v3258_v33  ;;  %v4750_v44 = vld [vmem:[#allocation5 + $0x44] sm:$0xf] }
  0x41   :  { %v4072_v48 = vld [vmem:[#allocation5 + $0x6c0] sm:$0xf]  ;;  %v4960_v49 = vld [vmem:[#allocation5 + $0x6cc] sm:$0xf0]  ;;  %1576 = vmatpush.bf16.msrb.mxu2 %v4089_v42  ;;  %v3945_v54 = vor.u32 %v4928_v47, %v3944_v45  ;;  %v3242_v45 = vld [vmem:[#allocation5 + $0x50] sm:$0xf0] }
  0x42   :  { %v3800_v53 = vld [vmem:[#allocation5 + $0x4a0] sm:$0xf]  ;;  %v4073_v55 = vor.u32 %v4960_v49, %v4072_v48  ;;  %v4892_v56 = vld [vmem:[#allocation5 + $0x4ac] sm:$0xf0]  ;;  %1589 = vmatpush.bf16.msrb.mxu3 %v3325_v46  ;;  %v4830_v32 = vld [vmem:[#allocation5 + $0x2c4] sm:$0xf] }
  0x43   :  { %v3928_v57 = vld [vmem:[#allocation5 + $0x5a0] sm:$0xf]  ;;  %v4924_v58 = vld [vmem:[#allocation5 + $0x5ac] sm:$0xf0]  ;;  %1551 = vmatpush.bf16.msrb.mxu0 %v3817_v52  ;;  %v3801_v0 = vor.u32 %v4892_v56, %v3800_v53  ;;  %v3245_v52 = vor.u32 %v4750_v44, %v3242_v45  ;;  %v4746_v56 = vld [vmem:[#allocation5 + $0x24] sm:$0xf] }
  0x44   :  { %v4056_v60 = vld [vmem:[#allocation5 + $0x6a0] sm:$0xf]  ;;  %v4956_v61 = vld [vmem:[#allocation5 + $0x6ac] sm:$0xf0]  ;;  %v3929_v1 = vor.u32 %v4924_v58, %v3928_v57  ;;  %1564 = vmatpush.bf16.msrb.mxu1 %v3945_v54  ;;  %v3226_v57 = vld [vmem:[#allocation5 + $0x30] sm:$0xf0] }
  0x45   :  { %v116_v2 = vld [vmem:[#allocation2 + $0x8] sm:$0xff]  ;;  %1577 = vmatpush.bf16.msrb.mxu2 %v4073_v55  ;;  %v4057_v4 = vor.u32 %v4956_v61, %v4056_v60  ;;  %v3784_v5 = vld [vmem:[#allocation5 + $0x480] sm:$0xf]  ;;  %v4794_v45 = vld [vmem:[#allocation5 + $0x1a4] sm:$0xf] }
  0x46   :  { %v4888_v6 = vld [vmem:[#allocation5 + $0x48c] sm:$0xf0]  ;;  %v3912_v7 = vld [vmem:[#allocation5 + $0x580] sm:$0xf]  ;;  %v359_v8 = vunpack.c.l.b16 %v116_v2  ;;  %v360_v10 = vunpack.c.h.b16 %v116_v2  ;;  %1590 = vmatpush.bf16.msrb.mxu3 %v3309_v59 }
  0x47   :  { %v4920_v12 = vld [vmem:[#allocation5 + $0x58c] sm:$0xf0]  ;;  %v4040_v13 = vld [vmem:[#allocation5 + $0x680] sm:$0xf]  ;;  %1552 = vmatpush.bf16.msrb.mxu0 %v3801_v0  ;;  %v3785_v21 = vor.u32 %v4888_v6, %v3784_v5  ;;  %v4742_v5 = vld [vmem:[#allocation5 + $0x4] sm:$0xf] }
  0x48   :  { %v4952_v14 = vld [vmem:[#allocation5 + $0x68c] sm:$0xf0]  ;;  %v5390_v18 = vpack.c.b16 %v359_v8, %v359_v8  ;;  %v5394_v20 = vpack.c.b16 %v360_v10, %v360_v10  ;;  %1565 = vmatpush.bf16.msrb.mxu1 %v3929_v1  ;;  %v3913_v23 = vor.u32 %v4920_v12, %v3912_v7  ;;  %v3768_v25 = vld [vmem:[#allocation5 + $0x460] sm:$0xf]  ;;  %v3210_v6 = vld [vmem:[#allocation5 + $0x10] sm:$0xf0] }
  0x49   :  { %1578 = vmatpush.bf16.msrb.mxu2 %v4057_v4  ;;  %v4041_v24 = vor.u32 %v4952_v14, %v4040_v13  ;;  %v4884_v26 = vld [vmem:[#allocation5 + $0x46c] sm:$0xf0]  ;;  %v3896_v27 = vld [vmem:[#allocation5 + $0x560] sm:$0xf]  ;;  %v3229_v4 = vor.u32 %v4746_v56, %v3226_v57  ;;  %v117_v7 = vld [vmem:[#allocation2 + $0x10] sm:$0xff] }
  0x4a   :  { %1591 = vmatpush.bf16.msrb.mxu3 %v3293_v11  ;;  %v4916_v29 = vld [vmem:[#allocation5 + $0x56c] sm:$0xf0]  ;;  %v4024_v30 = vld [vmem:[#allocation5 + $0x660] sm:$0xf]  ;;  %1532 = vmatmul.bf16.vlgmr.msra.gmra.mxu2 %v5390_v18  ;;  %v3769_v34 = vor.u32 %v4884_v26, %v3768_v25  ;;  %v4802_v8 = vld [vmem:[#allocation5 + $0x1e4] sm:$0xf]  ;;  %v362_v25 = vunpack.c.h.b16 %v117_v7  ;;  %v3213_v26 = vor.u32 %v4742_v5, %v3210_v6 }
  0x4b   :  { %v4948_v31 = vld [vmem:[#allocation5 + $0x66c] sm:$0xf0]  ;;  %1545 = vmatmul.bf16.vlgmr.msra.gmra.mxu3 %v5394_v20  ;;  %1553 = vmatpush.bf16.msrb.mxu0 %v3785_v21  ;;  %v3897_v35 = vor.u32 %v4916_v29, %v3896_v27  ;;  %v3752_v37 = vld [vmem:[#allocation5 + $0x440] sm:$0xf]  ;;  %v4834_v10 = vld [vmem:[#allocation5 + $0x2e4] sm:$0xf]  ;;  %v3453_v27 = vor.u32 %v4802_v8, %v3450_v9 }
  0x4c   :  { %1566 = vmatpush.bf16.msrb.mxu1 %v3913_v23  ;;  %v4025_v36 = vor.u32 %v4948_v31, %v4024_v30  ;;  %v4880_v38 = vld [vmem:[#allocation5 + $0x44c] sm:$0xf0]  ;;  %v3880_v39 = vld [vmem:[#allocation5 + $0x540] sm:$0xf]  ;;  %v3578_v12 = vld [vmem:[#allocation5 + $0x2f0] sm:$0xf0] }
  0x4d   :  { %1579 = vmatpush.bf16.msrb.mxu2 %v4041_v24  ;;  %v4912_v41 = vld [vmem:[#allocation5 + $0x54c] sm:$0xf0]  ;;  %v4008_v42 = vld [vmem:[#allocation5 + $0x640] sm:$0xf]  ;;  %v3753_v46 = vor.u32 %v4880_v38, %v3752_v37  ;;  %v4866_v13 = vld [vmem:[#allocation5 + $0x3e4] sm:$0xf]  ;;  %v361_v24 = vunpack.c.l.b16 %v117_v7  ;;  %v5402_v37 = vpack.c.b16 %v363_v15, %v363_v15 }
  0x4e   :  { %1592 = vmatpush.bf16.msrb.mxu3 %v3277_v28  ;;  %v4944_v43 = vld [vmem:[#allocation5 + $0x64c] sm:$0xf0]  ;;  %v3881_v47 = vor.u32 %v4912_v41, %v3880_v39  ;;  %v3736_v49 = vld [vmem:[#allocation5 + $0x420] sm:$0xf]  ;;  %v3706_v14 = vld [vmem:[#allocation5 + $0x3f0] sm:$0xf0]  ;;  %v3581_v28 = vor.u32 %v4834_v10, %v3578_v12  ;;  %v5406_v41 = vpack.c.b16 %v362_v25, %v362_v25 }
  0x4f   :  { %1554 = vmatpush.bf16.msrb.mxu0 %v3769_v34  ;;  %v4009_v48 = vor.u32 %v4944_v43, %v4008_v42  ;;  %v4876_v50 = vld [vmem:[#allocation5 + $0x42c] sm:$0xf0]  ;;  %v3864_v51 = vld [vmem:[#allocation5 + $0x520] sm:$0xf]  ;;  %v4898_v21 = vld [vmem:[#allocation5 + $0x4e4] sm:$0xf]  ;;  %v3709_v29 = vor.u32 %v4866_v13, %v3706_v14 }
  0x50   :  { %1567 = vmatpush.bf16.msrb.mxu1 %v3897_v35  ;;  %v4908_v53 = vld [vmem:[#allocation5 + $0x52c] sm:$0xf0]  ;;  %v3992_v54 = vld [vmem:[#allocation5 + $0x620] sm:$0xf]  ;;  %v3737_v59 = vor.u32 %v4876_v50, %v3736_v49  ;;  %v3834_v23 = vld [vmem:[#allocation5 + $0x4f0] sm:$0xf0] }
  0x51   :  { %1580 = vmatpush.bf16.msrb.mxu2 %v4025_v36  ;;  %v4940_v55 = vld [vmem:[#allocation5 + $0x62c] sm:$0xf0]  ;;  %v3720_v58 = vld [vmem:[#allocation5 + $0x400] sm:$0xf]  ;;  %v3865_v63 = vor.u32 %v4908_v53, %v3864_v51  ;;  %v4798_v30 = vld [vmem:[#allocation5 + $0x1c4] sm:$0xf]  ;;  %v3837_v33 = vor.u32 %v4898_v21, %v3834_v23 }
  0x52   :  { %1593 = vmatpush.bf16.msrb.mxu3 %v3261_v40  ;;  %v4872_v60 = vld [vmem:[#allocation5 + $0x40c] sm:$0xf0]  ;;  %v3848_v61 = vld [vmem:[#allocation5 + $0x500] sm:$0xf]  ;;  %v3993_v0 = vor.u32 %v4940_v55, %v3992_v54  ;;  %v3434_v31 = vld [vmem:[#allocation5 + $0x1d0] sm:$0xf0]  ;;  %v5404_v40 = vpack.c.b16 %v361_v24, %v361_v24 }
  0x53   :  { %1555 = vmatpush.bf16.msrb.mxu0 %v3753_v46  ;;  %v4904_v62 = vld [vmem:[#allocation5 + $0x50c] sm:$0xf0]  ;;  %v3976_v1 = vld [vmem:[#allocation5 + $0x600] sm:$0xf]  ;;  %v3721_v11 = vor.u32 %v4872_v60, %v3720_v58  ;;  %v3562_v34 = vld [vmem:[#allocation5 + $0x2d0] sm:$0xf0]  ;;  %v3437_v42 = vor.u32 %v4798_v30, %v3434_v31 }
  0x54   :  { %1568 = vmatpush.bf16.msrb.mxu1 %v3881_v47  ;;  %v4936_v2 = vld [vmem:[#allocation5 + $0x60c] sm:$0xf0]  ;;  %v3849_v16 = vor.u32 %v4904_v62, %v3848_v61  ;;  %v4862_v35 = vld [vmem:[#allocation5 + $0x3c4] sm:$0xf]  ;;  %v3690_v36 = vld [vmem:[#allocation5 + $0x3d0] sm:$0xf0]  ;;  %v3565_v43 = vor.u32 %v4830_v32, %v3562_v34 }
  0x55   :  { %1581 = vmatpush.bf16.msrb.mxu2 %v4009_v48  ;;  %v3977_v17 = vor.u32 %v4936_v2, %v3976_v1  ;;  %v4894_v38 = vld [vmem:[#allocation5 + $0x4c4] sm:$0xf]  ;;  %v3818_v39 = vld [vmem:[#allocation5 + $0x4d0] sm:$0xf0]  ;;  %v3693_v44 = vor.u32 %v4862_v35, %v3690_v36 }
  0x56   :  { %1594 = vmatpush.bf16.msrb.mxu3 %v3245_v52  ;;  %v3418_v46 = vld [vmem:[#allocation5 + $0x1b0] sm:$0xf0]  ;;  %v4826_v47 = vld [vmem:[#allocation5 + $0x2a4] sm:$0xf]  ;;  %v3821_v48 = vor.u32 %v4894_v38, %v3818_v39 }
  0x57   :  { %1556 = vmatpush.bf16.msrb.mxu0 %v3737_v59  ;;  %v3546_v49 = vld [vmem:[#allocation5 + $0x2b0] sm:$0xf0]  ;;  %v4858_v50 = vld [vmem:[#allocation5 + $0x3a4] sm:$0xf]  ;;  %v3421_v54 = vor.u32 %v4794_v45, %v3418_v46 }
  0x58   :  { %1569 = vmatpush.bf16.msrb.mxu1 %v3865_v63  ;;  %v3674_v51 = vld [vmem:[#allocation5 + $0x3b0] sm:$0xf0]  ;;  %v4890_v52 = vld [vmem:[#allocation5 + $0x4a4] sm:$0xf]  ;;  %v3549_v55 = vor.u32 %v4826_v47, %v3546_v49 }
  0x59   :  { %1582 = vmatpush.bf16.msrb.mxu2 %v3993_v0  ;;  %v3802_v53 = vld [vmem:[#allocation5 + $0x4b0] sm:$0xf0]  ;;  %v3677_v56 = vor.u32 %v4858_v50, %v3674_v51  ;;  %v4790_v57 = vld [vmem:[#allocation5 + $0x184] sm:$0xf] }
  0x5a   :  { %1595 = vmatpush.bf16.msrb.mxu3 %v3229_v4  ;;  %v3402_v58 = vld [vmem:[#allocation5 + $0x190] sm:$0xf0]  ;;  %v4822_v59 = vld [vmem:[#allocation5 + $0x284] sm:$0xf]  ;;  %v3805_v60 = vor.u32 %v4890_v52, %v3802_v53 }
  0x5b   :  { %1557 = vmatpush.bf16.msrb.mxu0 %v3721_v11  ;;  %v3530_v61 = vld [vmem:[#allocation5 + $0x290] sm:$0xf0]  ;;  %v4854_v62 = vld [vmem:[#allocation5 + $0x384] sm:$0xf]  ;;  %v3405_v2 = vor.u32 %v4790_v57, %v3402_v58 }
  0x5c   :  { %1570 = vmatpush.bf16.msrb.mxu1 %v3849_v16  ;;  %v3658_v63 = vld [vmem:[#allocation5 + $0x390] sm:$0xf0]  ;;  %v4886_v0 = vld [vmem:[#allocation5 + $0x484] sm:$0xf]  ;;  %v3533_v3 = vor.u32 %v4822_v59, %v3530_v61 }
  0x5d   :  { %1583 = vmatpush.bf16.msrb.mxu2 %v3977_v17  ;;  %v3786_v1 = vld [vmem:[#allocation5 + $0x490] sm:$0xf0]  ;;  %v3661_v4 = vor.u32 %v4854_v62, %v3658_v63  ;;  %v4786_v5 = vld [vmem:[#allocation5 + $0x164] sm:$0xf]  ;;  %v3328_v62 = vld [vmem:[#allocation5 + $0xe8] sm:$0xf] }
  0x5e   :  { %1596 = vmatpush.bf16.msrb.mxu3 %v3213_v26  ;;  %1558 = vmatmul.bf16.vlgmr.msrb.gmra.mxu0 %v5404_v40  ;;  %v3386_v6 = vld [vmem:[#allocation5 + $0x170] sm:$0xf0]  ;;  %v4818_v7 = vld [vmem:[#allocation5 + $0x264] sm:$0xf]  ;;  %v3789_v8 = vor.u32 %v4886_v0, %v3786_v1  ;;  %v4773_v63 = vld [vmem:[#allocation5 + $0xf4] sm:$0xf0] }
  0x5f   :  { %1602 = vmatpush.bf16.msra.mxu0 %v3453_v27  ;;  %1571 = vmatmul.bf16.vlgmr.msrb.gmra.mxu1 %v5406_v41  ;;  %v3514_v9 = vld [vmem:[#allocation5 + $0x270] sm:$0xf0]  ;;  %v4850_v10 = vld [vmem:[#allocation5 + $0x364] sm:$0xf]  ;;  %v3389_v14 = vor.u32 %v4786_v5, %v3386_v6 }
  0x60   :  { %1615 = vmatpush.bf16.msra.mxu1 %v3581_v28  ;;  %1584 = vmatmul.bf16.vlgmr.msrb.gmra.mxu2 %v5402_v37  ;;  %v3642_v11 = vld [vmem:[#allocation5 + $0x370] sm:$0xf0]  ;;  %v4882_v12 = vld [vmem:[#allocation5 + $0x464] sm:$0xf]  ;;  %v3517_v15 = vor.u32 %v4818_v7, %v3514_v9  ;;  %v3329_v7 = vor.u32 %v4773_v63, %v3328_v62 }
  0x61   :  { %1628 = vmatpush.bf16.msra.mxu2 %v3709_v29  ;;  %1597 = vmatmul.bf16.vlgmr.msrb.gmra.mxu3 %v5392_v19  ;;  %v3770_v13 = vld [vmem:[#allocation5 + $0x470] sm:$0xf0]  ;;  %v3645_v16 = vor.u32 %v4850_v10, %v3642_v11  ;;  %v4782_v17 = vld [vmem:[#allocation5 + $0x144] sm:$0xf] }
  0x62   :  { %1641 = vmatpush.bf16.msra.mxu3 %v3837_v33  ;;  %v3370_v21 = vld [vmem:[#allocation5 + $0x150] sm:$0xf0]  ;;  %v4814_v23 = vld [vmem:[#allocation5 + $0x244] sm:$0xf]  ;;  %v3773_v24 = vor.u32 %v4882_v12, %v3770_v13  ;;  %v3312_v13 = vld [vmem:[#allocation5 + $0xc8] sm:$0xf] }
  0x63   :  { %1603 = vmatpush.bf16.msra.mxu0 %v3437_v42  ;;  %v3498_v25 = vld [vmem:[#allocation5 + $0x250] sm:$0xf0]  ;;  %v4846_v26 = vld [vmem:[#allocation5 + $0x344] sm:$0xf]  ;;  %v3373_v30 = vor.u32 %v4782_v17, %v3370_v21 }
  0x64   :  { %1616 = vmatpush.bf16.msra.mxu1 %v3565_v43  ;;  %v3626_v27 = vld [vmem:[#allocation5 + $0x350] sm:$0xf0]  ;;  %v4878_v28 = vld [vmem:[#allocation5 + $0x444] sm:$0xf]  ;;  %v3501_v31 = vor.u32 %v4814_v23, %v3498_v25 }
  0x65   :  { %1629 = vmatpush.bf16.msra.mxu2 %v3693_v44  ;;  %v3754_v29 = vld [vmem:[#allocation5 + $0x450] sm:$0xf0]  ;;  %v3629_v32 = vor.u32 %v4846_v26, %v3626_v27  ;;  %v4778_v33 = vld [vmem:[#allocation5 + $0x124] sm:$0xf] }
  0x66   :  { %1642 = vmatpush.bf16.msra.mxu3 %v3821_v48  ;;  %v3354_v34 = vld [vmem:[#allocation5 + $0x130] sm:$0xf0]  ;;  %v4810_v35 = vld [vmem:[#allocation5 + $0x224] sm:$0xf]  ;;  %v3757_v36 = vor.u32 %v4878_v28, %v3754_v29  ;;  %v3296_v29 = vld [vmem:[#allocation5 + $0xa8] sm:$0xf] }
  0x67   :  { %1604 = vmatpush.bf16.msra.mxu0 %v3421_v54  ;;  %v3482_v38 = vld [vmem:[#allocation5 + $0x230] sm:$0xf0]  ;;  %v4842_v39 = vld [vmem:[#allocation5 + $0x324] sm:$0xf]  ;;  %v3357_v45 = vor.u32 %v4778_v33, %v3354_v34 }
  0x68   :  { %1617 = vmatpush.bf16.msra.mxu1 %v3549_v55  ;;  %v3610_v42 = vld [vmem:[#allocation5 + $0x330] sm:$0xf0]  ;;  %v4874_v43 = vld [vmem:[#allocation5 + $0x424] sm:$0xf]  ;;  %v3485_v48 = vor.u32 %v4810_v35, %v3482_v38 }
  0x69   :  { %1630 = vmatpush.bf16.msra.mxu2 %v3677_v56  ;;  %v3738_v44 = vld [vmem:[#allocation5 + $0x430] sm:$0xf0]  ;;  %v4774_v46 = vld [vmem:[#allocation5 + $0x104] sm:$0xf]  ;;  %v3613_v49 = vor.u32 %v4842_v39, %v3610_v42 }
  0x6a   :  { %1643 = vmatpush.bf16.msra.mxu3 %v3805_v60  ;;  %v3338_v47 = vld [vmem:[#allocation5 + $0x110] sm:$0xf0]  ;;  %v4806_v50 = vld [vmem:[#allocation5 + $0x204] sm:$0xf]  ;;  %v3741_v53 = vor.u32 %v4874_v43, %v3738_v44  ;;  %v3280_v44 = vld [vmem:[#allocation5 + $0x88] sm:$0xf] }
  0x6b   :  { %1605 = vmatpush.bf16.msra.mxu0 %v3405_v2  ;;  %v3466_v51 = vld [vmem:[#allocation5 + $0x210] sm:$0xf0]  ;;  %v4838_v52 = vld [vmem:[#allocation5 + $0x304] sm:$0xf]  ;;  %v3341_v60 = vor.u32 %v4774_v46, %v3338_v47  ;;  %v3456_v2 = vld [vmem:[#allocation5 + $0x1e8] sm:$0xf] }
  0x6c   :  { %1618 = vmatpush.bf16.msra.mxu1 %v3533_v3  ;;  %v3594_v54 = vld [vmem:[#allocation5 + $0x310] sm:$0xf0]  ;;  %v4870_v55 = vld [vmem:[#allocation5 + $0x404] sm:$0xf]  ;;  %v3469_v0 = vor.u32 %v4806_v50, %v3466_v51  ;;  %v4805_v3 = vld [vmem:[#allocation5 + $0x1f4] sm:$0xf0] }
  0x6d   :  { %1631 = vmatpush.bf16.msra.mxu2 %v3661_v4  ;;  %v3722_v56 = vld [vmem:[#allocation5 + $0x410] sm:$0xf0]  ;;  %v4930_v57 = vld [vmem:[#allocation5 + $0x5e4] sm:$0xf]  ;;  %v3597_v1 = vor.u32 %v4838_v52, %v3594_v54  ;;  %v3457_v11 = vor.u32 %v4805_v3, %v3456_v2  ;;  %v3408_v46 = vld [vmem:[#allocation5 + $0x188] sm:$0xf] }
  0x6e   :  { %1644 = vmatpush.bf16.msra.mxu3 %v3789_v8  ;;  %v3962_v58 = vld [vmem:[#allocation5 + $0x5f0] sm:$0xf0]  ;;  %v4962_v59 = vld [vmem:[#allocation5 + $0x6e4] sm:$0xf]  ;;  %v3725_v4 = vor.u32 %v4870_v55, %v3722_v56  ;;  %v4793_v47 = vld [vmem:[#allocation5 + $0x194] sm:$0xf0] }
  0x6f   :  { %1606 = vmatpush.bf16.msra.mxu0 %v3389_v14  ;;  %v4090_v61 = vld [vmem:[#allocation5 + $0x6f0] sm:$0xf0]  ;;  %v3965_v5 = vor.u32 %v4930_v57, %v3962_v58  ;;  %v4926_v8 = vld [vmem:[#allocation5 + $0x5c4] sm:$0xf]  ;;  %v4769_v14 = vld [vmem:[#allocation5 + $0xd4] sm:$0xf0]  ;;  %v3409_v54 = vor.u32 %v4793_v47, %v3408_v46 }
  0x70   :  { %1619 = vmatpush.bf16.msra.mxu1 %v3517_v15  ;;  %v4093_v6 = vor.u32 %v4962_v59, %v4090_v61  ;;  %v3946_v9 = vld [vmem:[#allocation5 + $0x5d0] sm:$0xf0]  ;;  %v4958_v10 = vld [vmem:[#allocation5 + $0x6c4] sm:$0xf]  ;;  %v3440_v15 = vld [vmem:[#allocation5 + $0x1c8] sm:$0xf]  ;;  %v3313_v23 = vor.u32 %v4769_v14, %v3312_v13 }
  0x71   :  { %1632 = vmatpush.bf16.msra.mxu2 %v3645_v16  ;;  %v4074_v12 = vld [vmem:[#allocation5 + $0x6d0] sm:$0xf0]  ;;  %v4801_v16 = vld [vmem:[#allocation5 + $0x1d4] sm:$0xf0]  ;;  %v3949_v17 = vor.u32 %v4926_v8, %v3946_v9  ;;  %v4954_v26 = vld [vmem:[#allocation5 + $0x6a4] sm:$0xf] }
  0x72   :  { %1645 = vmatpush.bf16.msra.mxu3 %v3773_v24  ;;  %v4077_v21 = vor.u32 %v4958_v10, %v4074_v12  ;;  %v4922_v24 = vld [vmem:[#allocation5 + $0x5a4] sm:$0xf]  ;;  %v3930_v25 = vld [vmem:[#allocation5 + $0x5b0] sm:$0xf0]  ;;  %v3441_v27 = vor.u32 %v4801_v16, %v3440_v15  ;;  %v3264_v56 = vld [vmem:[#allocation5 + $0x68] sm:$0xf] }
  0x73   :  { %1607 = vmatpush.bf16.msra.mxu0 %v3373_v30  ;;  %v4058_v28 = vld [vmem:[#allocation5 + $0x6b0] sm:$0xf0]  ;;  %v4765_v30 = vld [vmem:[#allocation5 + $0xb4] sm:$0xf0]  ;;  %v3933_v33 = vor.u32 %v4922_v24, %v3930_v25  ;;  %v4950_v39 = vld [vmem:[#allocation5 + $0x684] sm:$0xf] }
  0x74   :  { %1620 = vmatpush.bf16.msra.mxu1 %v3501_v31  ;;  %v3424_v31 = vld [vmem:[#allocation5 + $0x1a8] sm:$0xf]  ;;  %v4061_v34 = vor.u32 %v4954_v26, %v4058_v28  ;;  %v3297_v35 = vor.u32 %v4765_v30, %v3296_v29  ;;  %v3914_v38 = vld [vmem:[#allocation5 + $0x590] sm:$0xf0]  ;;  %v4914_v51 = vld [vmem:[#allocation5 + $0x564] sm:$0xf] }
  0x75   :  { %1633 = vmatpush.bf16.msra.mxu2 %v3629_v32  ;;  %v4797_v32 = vld [vmem:[#allocation5 + $0x1b4] sm:$0xf0]  ;;  %v4042_v43 = vld [vmem:[#allocation5 + $0x690] sm:$0xf0]  ;;  %v3392_v58 = vld [vmem:[#allocation5 + $0x168] sm:$0xf] }
  0x76   :  { %1646 = vmatpush.bf16.msra.mxu3 %v3757_v36  ;;  %v4918_v36 = vld [vmem:[#allocation5 + $0x584] sm:$0xf]  ;;  %v3425_v42 = vor.u32 %v4797_v32, %v3424_v31  ;;  %v3898_v52 = vld [vmem:[#allocation5 + $0x570] sm:$0xf0]  ;;  %v4757_v57 = vld [vmem:[#allocation5 + $0x74] sm:$0xf0] }
  0x77   :  { %1608 = vmatpush.bf16.msra.mxu0 %v3357_v45  ;;  %v4761_v45 = vld [vmem:[#allocation5 + $0x94] sm:$0xf0]  ;;  %v4026_v55 = vld [vmem:[#allocation5 + $0x670] sm:$0xf0]  ;;  %v3265_v62 = vor.u32 %v4757_v57, %v3264_v56  ;;  %v4910_v63 = vld [vmem:[#allocation5 + $0x544] sm:$0xf] }
  0x78   :  { %1621 = vmatpush.bf16.msra.mxu1 %v3485_v48  ;;  %v3917_v48 = vor.u32 %v4918_v36, %v3914_v38  ;;  %v3281_v50 = vor.u32 %v4761_v45, %v3280_v44  ;;  %v4789_v59 = vld [vmem:[#allocation5 + $0x174] sm:$0xf0]  ;;  %v4010_v3 = vld [vmem:[#allocation5 + $0x650] sm:$0xf0]  ;;  %v4938_v13 = vld [vmem:[#allocation5 + $0x624] sm:$0xf] }
  0x79   :  { %1634 = vmatpush.bf16.msra.mxu2 %v3613_v49  ;;  %v4045_v49 = vor.u32 %v4950_v39, %v4042_v43  ;;  %v3393_v2 = vor.u32 %v4789_v59, %v3392_v58  ;;  %v3866_v12 = vld [vmem:[#allocation5 + $0x530] sm:$0xf0]  ;;  %v3232_v16 = vld [vmem:[#allocation5 + $0x28] sm:$0xf]  ;;  %v4902_v25 = vld [vmem:[#allocation5 + $0x504] sm:$0xf] }
  0x7a   :  { %1647 = vmatpush.bf16.msra.mxu3 %v3741_v53  ;;  %v4946_v53 = vld [vmem:[#allocation5 + $0x664] sm:$0xf]  ;;  %v3994_v15 = vld [vmem:[#allocation5 + $0x630] sm:$0xf0]  ;;  %v3216_v31 = vld [vmem:[#allocation5 + $0x8] sm:$0xf] }
  0x7b   :  { %1609 = vmatpush.bf16.msra.mxu0 %v3341_v60  ;;  %v3901_v60 = vor.u32 %v4914_v51, %v3898_v52  ;;  %v4029_v61 = vor.u32 %v4946_v53, %v4026_v55  ;;  %v3850_v26 = vld [vmem:[#allocation5 + $0x510] sm:$0xf0]  ;;  %v4934_v29 = vld [vmem:[#allocation5 + $0x604] sm:$0xf]  ;;  %v3584_v36 = vld [vmem:[#allocation5 + $0x2e8] sm:$0xf] }
  0x7c   :  { %1622 = vmatpush.bf16.msra.mxu1 %v3469_v0  ;;  %v3882_v0 = vld [vmem:[#allocation5 + $0x550] sm:$0xf0]  ;;  %v4837_v38 = vld [vmem:[#allocation5 + $0x2f4] sm:$0xf0]  ;;  %v3712_v39 = vld [vmem:[#allocation5 + $0x3e8] sm:$0xf] }
  0x7d   :  { %1635 = vmatpush.bf16.msra.mxu2 %v3597_v1  ;;  %v4942_v1 = vld [vmem:[#allocation5 + $0x644] sm:$0xf]  ;;  %v3885_v8 = vor.u32 %v4910_v63, %v3882_v0  ;;  %v3978_v30 = vld [vmem:[#allocation5 + $0x610] sm:$0xf0]  ;;  %v4869_v43 = vld [vmem:[#allocation5 + $0x3f4] sm:$0xf0]  ;;  %v3585_v51 = vor.u32 %v4837_v38, %v3584_v36 }
  0x7e   :  { %1648 = vmatpush.bf16.msra.mxu3 %v3725_v4  ;;  %1610 = vmatmul.bf16.vlgmr.msra.gmra.mxu0 %v5396_v22  ;;  %v3248_v4 = vld [vmem:[#allocation5 + $0x48] sm:$0xf]  ;;  %v4013_v9 = vor.u32 %v4942_v1, %v4010_v3  ;;  %v4901_v45 = vld [vmem:[#allocation5 + $0x4f4] sm:$0xf0]  ;;  %v3981_v46 = vor.u32 %v4934_v29, %v3978_v30  ;;  %v3713_v52 = vor.u32 %v4869_v43, %v3712_v39 }
  0x7f   :  { %1654 = vmatpush.bf16.msrb.mxu0 %v3965_v5  ;;  %1623 = vmatmul.bf16.vlgmr.msra.gmra.mxu1 %v5390_v18  ;;  %v4753_v5 = vld [vmem:[#allocation5 + $0x54] sm:$0xf0]  ;;  %v3840_v44 = vld [vmem:[#allocation5 + $0x4e8] sm:$0xf] }
  0x80   :  { %1667 = vmatpush.bf16.msrb.mxu1 %v4093_v6  ;;  %1636 = vmatmul.bf16.vlgmr.msra.gmra.mxu2 %v5394_v20  ;;  %v3376_v6 = vld [vmem:[#allocation5 + $0x148] sm:$0xf]  ;;  %v3249_v10 = vor.u32 %v4753_v5, %v3248_v4  ;;  %v3841_v53 = vor.u32 %v4901_v45, %v3840_v44  ;;  %v4833_v55 = vld [vmem:[#allocation5 + $0x2d4] sm:$0xf0] }
  0x81   :  { %1680 = vmatpush.bf16.msrb.mxu2 %v3329_v7  ;;  %1649 = vmatmul.bf16.vlgmr.msra.gmra.mxu3 %v5404_v40  ;;  %v4785_v7 = vld [vmem:[#allocation5 + $0x154] sm:$0xf0]  ;;  %v3696_v56 = vld [vmem:[#allocation5 + $0x3c8] sm:$0xf] }
  0x82   :  { %1693 = vmatpush.bf16.msrb.mxu3 %v3457_v11  ;;  %v4906_v11 = vld [vmem:[#allocation5 + $0x524] sm:$0xf]  ;;  %v3377_v14 = vor.u32 %v4785_v7, %v3376_v6  ;;  %v4865_v58 = vld [vmem:[#allocation5 + $0x3d4] sm:$0xf0]  ;;  %v3824_v59 = vld [vmem:[#allocation5 + $0x4c8] sm:$0xf] }
  0x83   :  { %1655 = vmatpush.bf16.msrb.mxu0 %v3949_v17  ;;  %v4749_v17 = vld [vmem:[#allocation5 + $0x34] sm:$0xf0]  ;;  %v3869_v24 = vor.u32 %v4906_v11, %v3866_v12  ;;  %v3697_v0 = vor.u32 %v4865_v58, %v3696_v56  ;;  %v3680_v4 = vld [vmem:[#allocation5 + $0x3a8] sm:$0xf] }
  0x84   :  { %1668 = vmatpush.bf16.msrb.mxu1 %v4077_v21  ;;  %v3360_v21 = vld [vmem:[#allocation5 + $0x128] sm:$0xf]  ;;  %v3233_v28 = vor.u32 %v4749_v17, %v3232_v16  ;;  %v4829_v3 = vld [vmem:[#allocation5 + $0x2b4] sm:$0xf0] }
  0x85   :  { %1681 = vmatpush.bf16.msrb.mxu2 %v3313_v23  ;;  %v4781_v23 = vld [vmem:[#allocation5 + $0x134] sm:$0xf0]  ;;  %v3808_v7 = vld [vmem:[#allocation5 + $0x4a8] sm:$0xf] }
  0x86   :  { %1694 = vmatpush.bf16.msrb.mxu3 %v3441_v27  ;;  %v3997_v27 = vor.u32 %v4938_v13, %v3994_v15  ;;  %v3361_v32 = vor.u32 %v4781_v23, %v3360_v21  ;;  %v4861_v6 = vld [vmem:[#allocation5 + $0x3b4] sm:$0xf0]  ;;  %v3664_v16 = vld [vmem:[#allocation5 + $0x388] sm:$0xf] }
  0x87   :  { %1656 = vmatpush.bf16.msrb.mxu0 %v3933_v33  ;;  %v4745_v33 = vld [vmem:[#allocation5 + $0x14] sm:$0xf0]  ;;  %v3681_v12 = vor.u32 %v4861_v6, %v3680_v4  ;;  %v3792_v23 = vld [vmem:[#allocation5 + $0x488] sm:$0xf] }
  0x88   :  { %1669 = vmatpush.bf16.msrb.mxu1 %v4061_v34  ;;  %v3344_v34 = vld [vmem:[#allocation5 + $0x108] sm:$0xf]  ;;  %v3217_v47 = vor.u32 %v4745_v33, %v3216_v31  ;;  %v4825_v15 = vld [vmem:[#allocation5 + $0x294] sm:$0xf0] }
  0x89   :  { %1682 = vmatpush.bf16.msrb.mxu2 %v3297_v35  ;;  %v4777_v35 = vld [vmem:[#allocation5 + $0x114] sm:$0xf0]  ;;  %v3520_v30 = vld [vmem:[#allocation5 + $0x268] sm:$0xf] }
  0x8a   :  { %1695 = vmatpush.bf16.msrb.mxu3 %v3425_v42  ;;  %v3853_v42 = vor.u32 %v4902_v25, %v3850_v26  ;;  %v4857_v21 = vld [vmem:[#allocation5 + $0x394] sm:$0xf0]  ;;  %v3920_v25 = vld [vmem:[#allocation5 + $0x588] sm:$0xf] }
  0x8b   :  { %1657 = vmatpush.bf16.msrb.mxu0 %v3917_v48  ;;  %v3968_v48 = vld [vmem:[#allocation5 + $0x5e8] sm:$0xf]  ;;  %v4921_v26 = vld [vmem:[#allocation5 + $0x594] sm:$0xf0] }
  0x8c   :  { %1670 = vmatpush.bf16.msrb.mxu1 %v4045_v49  ;;  %v4933_v49 = vld [vmem:[#allocation5 + $0x5f4] sm:$0xf0]  ;;  %v3921_v33 = vor.u32 %v4921_v26, %v3920_v25  ;;  %v3904_v38 = vld [vmem:[#allocation5 + $0x568] sm:$0xf] }
  0x8d   :  { %1683 = vmatpush.bf16.msrb.mxu2 %v3281_v50  ;;  %v3345_v50 = vor.u32 %v4777_v35, %v3344_v34  ;;  %v3969_v57 = vor.u32 %v4933_v49, %v3968_v48  ;;  %v4821_v31 = vld [vmem:[#allocation5 + $0x274] sm:$0xf0]  ;;  %v3776_v35 = vld [vmem:[#allocation5 + $0x468] sm:$0xf] }
  0x8e   :  { %1696 = vmatpush.bf16.msrb.mxu3 %v3409_v54  ;;  %v3568_v54 = vld [vmem:[#allocation5 + $0x2c8] sm:$0xf]  ;;  %v4853_v34 = vld [vmem:[#allocation5 + $0x374] sm:$0xf0] }
  0x8f   :  { %1658 = vmatpush.bf16.msrb.mxu0 %v3901_v60  ;;  %v4897_v60 = vld [vmem:[#allocation5 + $0x4d4] sm:$0xf0]  ;;  %v3569_v63 = vor.u32 %v4833_v55, %v3568_v54  ;;  %v3504_v45 = vld [vmem:[#allocation5 + $0x248] sm:$0xf] }
  0x90   :  { %1671 = vmatpush.bf16.msrb.mxu1 %v4029_v61  ;;  %v3952_v61 = vld [vmem:[#allocation5 + $0x5c8] sm:$0xf]  ;;  %v3825_v1 = vor.u32 %v4897_v60, %v3824_v59  ;;  %v4885_v36 = vld [vmem:[#allocation5 + $0x474] sm:$0xf0] }
  0x91   :  { %1684 = vmatpush.bf16.msrb.mxu2 %v3265_v62  ;;  %v4929_v62 = vld [vmem:[#allocation5 + $0x5d4] sm:$0xf0]  ;;  %v3777_v44 = vor.u32 %v4885_v36, %v3776_v35  ;;  %v3616_v59 = vld [vmem:[#allocation5 + $0x328] sm:$0xf]  ;;  %v4767_v35 = vld [vmem:[#allocation5 + $0xcc] sm:$0xf] }
  0x92   :  { %1697 = vmatpush.bf16.msrb.mxu3 %v3393_v2  ;;  %v3552_v2 = vld [vmem:[#allocation5 + $0x2a8] sm:$0xf]  ;;  %v3953_v5 = vor.u32 %v4929_v62, %v3952_v61  ;;  %v4917_v39 = vld [vmem:[#allocation5 + $0x574] sm:$0xf0] }
  0x93   :  { %1659 = vmatpush.bf16.msrb.mxu0 %v3885_v8  ;;  %v4893_v8 = vld [vmem:[#allocation5 + $0x4b4] sm:$0xf0]  ;;  %v3553_v11 = vor.u32 %v4829_v3, %v3552_v2  ;;  %v3905_v48 = vor.u32 %v4917_v39, %v3904_v38  ;;  %v3744_v62 = vld [vmem:[#allocation5 + $0x428] sm:$0xf]  ;;  %v3314_v38 = vld [vmem:[#allocation5 + $0xd8] sm:$0xf0] }
  0x94   :  { %1672 = vmatpush.bf16.msrb.mxu1 %v4013_v9  ;;  %v3936_v9 = vld [vmem:[#allocation5 + $0x5a8] sm:$0xf]  ;;  %v3809_v13 = vor.u32 %v4893_v8, %v3808_v7  ;;  %v4849_v49 = vld [vmem:[#allocation5 + $0x354] sm:$0xf0]  ;;  %v4799_v39 = vld [vmem:[#allocation5 + $0x1cc] sm:$0xf] }
  0x95   :  { %1685 = vmatpush.bf16.msrb.mxu2 %v3249_v10  ;;  %v4925_v10 = vld [vmem:[#allocation5 + $0x5b4] sm:$0xf0]  ;;  %v3472_v3 = vld [vmem:[#allocation5 + $0x208] sm:$0xf] }
  0x96   :  { %1698 = vmatpush.bf16.msrb.mxu3 %v3377_v14  ;;  %v3536_v14 = vld [vmem:[#allocation5 + $0x288] sm:$0xf]  ;;  %v3937_v17 = vor.u32 %v4925_v10, %v3936_v9  ;;  %v4813_v58 = vld [vmem:[#allocation5 + $0x234] sm:$0xf0] }
  0x97   :  { %1660 = vmatpush.bf16.msrb.mxu0 %v3869_v24  ;;  %v4889_v24 = vld [vmem:[#allocation5 + $0x494] sm:$0xf0]  ;;  %v3600_v7 = vld [vmem:[#allocation5 + $0x308] sm:$0xf] }
  0x98   :  { %1673 = vmatpush.bf16.msrb.mxu1 %v3997_v27  ;;  %v3537_v27 = vor.u32 %v4825_v15, %v3536_v14  ;;  %v3793_v29 = vor.u32 %v4889_v24, %v3792_v23  ;;  %v4845_v61 = vld [vmem:[#allocation5 + $0x334] sm:$0xf0]  ;;  %v3728_v9 = vld [vmem:[#allocation5 + $0x408] sm:$0xf]  ;;  %v4803_v23 = vld [vmem:[#allocation5 + $0x1ec] sm:$0xf] }
  0x99   :  { %1686 = vmatpush.bf16.msrb.mxu2 %v3233_v28  ;;  %v3665_v28 = vor.u32 %v4857_v21, %v3664_v16  ;;  %v4809_v4 = vld [vmem:[#allocation5 + $0x214] sm:$0xf0]  ;;  %v4096_v14 = vld [vmem:[#allocation5 + $0x6e8] sm:$0xf]  ;;  %v4771_v16 = vld [vmem:[#allocation5 + $0xec] sm:$0xf] }
  0x9a   :  { %1699 = vmatpush.bf16.msrb.mxu3 %v3361_v32  ;;  %v3648_v32 = vld [vmem:[#allocation5 + $0x368] sm:$0xf]  ;;  %v4841_v8 = vld [vmem:[#allocation5 + $0x314] sm:$0xf0]  ;;  %v3330_v21 = vld [vmem:[#allocation5 + $0xf8] sm:$0xf0] }
  0x9b   :  { %1661 = vmatpush.bf16.msrb.mxu0 %v3853_v42  ;;  %v3521_v42 = vor.u32 %v4821_v31, %v3520_v30  ;;  %v3649_v43 = vor.u32 %v4853_v34, %v3648_v32  ;;  %v4965_v15 = vld [vmem:[#allocation5 + $0x6f4] sm:$0xf0]  ;;  %v3458_v24 = vld [vmem:[#allocation5 + $0x1f8] sm:$0xf0]  ;;  %v3601_v25 = vor.u32 %v4841_v8, %v3600_v7  ;;  %v3333_v31 = vor.u32 %v4771_v16, %v3330_v21  ;;  %v4032_v8 = vld [vmem:[#allocation5 + $0x668] sm:$0xf] }
  0x9c   :  { %1674 = vmatpush.bf16.msrb.mxu1 %v3981_v46  ;;  %v4817_v46 = vld [vmem:[#allocation5 + $0x254] sm:$0xf0]  ;;  %v4097_v30 = vor.u32 %v4965_v15, %v4096_v14  ;;  %v3461_v32 = vor.u32 %v4803_v23, %v3458_v24  ;;  %v3394_v14 = vld [vmem:[#allocation5 + $0x178] sm:$0xf0]  ;;  %v4819_v15 = vld [vmem:[#allocation5 + $0x26c] sm:$0xf] }
  0x9d   :  { %1687 = vmatpush.bf16.msrb.mxu2 %v3217_v47  ;;  %v3632_v47 = vld [vmem:[#allocation5 + $0x348] sm:$0xf]  ;;  %v3505_v54 = vor.u32 %v4817_v46, %v3504_v45  ;;  %v4961_v34 = vld [vmem:[#allocation5 + $0x6d4] sm:$0xf0]  ;;  %v3317_v46 = vor.u32 %v4767_v35, %v3314_v38  ;;  %v3522_v16 = vld [vmem:[#allocation5 + $0x278] sm:$0xf0] }
  0x9e   :  { %1700 = vmatpush.bf16.msrb.mxu3 %v3345_v50  ;;  %1662 = vmatmul.bf16.vlgmr.msrb.gmra.mxu0 %v5406_v41  ;;  %v3760_v50 = vld [vmem:[#allocation5 + $0x448] sm:$0xf]  ;;  %v3633_v55 = vor.u32 %v4849_v49, %v3632_v47  ;;  %v4957_v49 = vld [vmem:[#allocation5 + $0x6b4] sm:$0xf0] }
  0x9f   :  { %1706 = vmatpush.bf16.msra.mxu0 %v3585_v51  ;;  %1675 = vmatmul.bf16.vlgmr.msrb.gmra.mxu1 %v5402_v37  ;;  %v4881_v51 = vld [vmem:[#allocation5 + $0x454] sm:$0xf0]  ;;  %v4016_v24 = vld [vmem:[#allocation5 + $0x648] sm:$0xf] }
  0xa0   :  { %1719 = vmatpush.bf16.msra.mxu1 %v3713_v52  ;;  %1688 = vmatmul.bf16.vlgmr.msrb.gmra.mxu2 %v5392_v19  ;;  %v3888_v52 = vld [vmem:[#allocation5 + $0x548] sm:$0xf]  ;;  %v3761_v56 = vor.u32 %v4881_v51, %v3760_v50  ;;  %v4763_v50 = vld [vmem:[#allocation5 + $0xac] sm:$0xf] }
  0xa1   :  { %1732 = vmatpush.bf16.msra.mxu2 %v3841_v53  ;;  %1701 = vmatmul.bf16.vlgmr.msrb.gmra.mxu3 %v5396_v22  ;;  %v4913_v53 = vld [vmem:[#allocation5 + $0x554] sm:$0xf0]  ;;  %v4000_v38 = vld [vmem:[#allocation5 + $0x628] sm:$0xf] }
  0xa2   :  { %1745 = vmatpush.bf16.msra.mxu3 %v3969_v57  ;;  %v3488_v57 = vld [vmem:[#allocation5 + $0x228] sm:$0xf]  ;;  %v3889_v60 = vor.u32 %v4913_v53, %v3888_v52  ;;  %v3298_v52 = vld [vmem:[#allocation5 + $0xb8] sm:$0xf0]  ;;  %v4795_v53 = vld [vmem:[#allocation5 + $0x1ac] sm:$0xf] }
  0xa3   :  { %1707 = vmatpush.bf16.msra.mxu0 %v3569_v63  ;;  %v4877_v63 = vld [vmem:[#allocation5 + $0x434] sm:$0xf0]  ;;  %v3489_v2 = vor.u32 %v4813_v58, %v3488_v57  ;;  %v3301_v58 = vor.u32 %v4763_v50, %v3298_v52 }
  0xa4   :  { %1720 = vmatpush.bf16.msra.mxu1 %v3697_v0  ;;  %v3872_v0 = vld [vmem:[#allocation5 + $0x528] sm:$0xf]  ;;  %v3745_v6 = vor.u32 %v4877_v63, %v3744_v62  ;;  %v4759_v62 = vld [vmem:[#allocation5 + $0x8c] sm:$0xf]  ;;  %v4937_v52 = vld [vmem:[#allocation5 + $0x614] sm:$0xf0] }
  0xa5   :  { %1733 = vmatpush.bf16.msra.mxu2 %v3825_v1  ;;  %v4909_v1 = vld [vmem:[#allocation5 + $0x534] sm:$0xf0] }
  0xa6   :  { %1746 = vmatpush.bf16.msra.mxu3 %v3953_v5  ;;  %v3617_v5 = vor.u32 %v4845_v61, %v3616_v59  ;;  %v3873_v10 = vor.u32 %v4909_v1, %v3872_v0  ;;  %v4953_v61 = vld [vmem:[#allocation5 + $0x694] sm:$0xf0]  ;;  %v3282_v0 = vld [vmem:[#allocation5 + $0x98] sm:$0xf0]  ;;  %v4791_v1 = vld [vmem:[#allocation5 + $0x18c] sm:$0xf] }
  0xa7   :  { %1708 = vmatpush.bf16.msra.mxu0 %v3553_v11  ;;  %v4873_v11 = vld [vmem:[#allocation5 + $0x414] sm:$0xf0] }
  0xa8   :  { %1721 = vmatpush.bf16.msra.mxu1 %v3681_v12  ;;  %v3856_v12 = vld [vmem:[#allocation5 + $0x508] sm:$0xf]  ;;  %v3729_v26 = vor.u32 %v4873_v11, %v3728_v9  ;;  %v4949_v9 = vld [vmem:[#allocation5 + $0x674] sm:$0xf0] }
  0xa9   :  { %1734 = vmatpush.bf16.msra.mxu2 %v3809_v13  ;;  %v4905_v13 = vld [vmem:[#allocation5 + $0x514] sm:$0xf0] }
  0xaa   :  { %1747 = vmatpush.bf16.msra.mxu3 %v3937_v17  ;;  %v3473_v17 = vor.u32 %v4809_v4, %v3472_v3  ;;  %v4823_v3 = vld [vmem:[#allocation5 + $0x28c] sm:$0xf]  ;;  %v3538_v4 = vld [vmem:[#allocation5 + $0x298] sm:$0xf0] }
  0xab   :  { %1709 = vmatpush.bf16.msra.mxu0 %v3537_v27  ;;  %v4835_v27 = vld [vmem:[#allocation5 + $0x2ec] sm:$0xf]  ;;  %v3541_v11 = vor.u32 %v4823_v3, %v3538_v4  ;;  %v3842_v4 = vld [vmem:[#allocation5 + $0x4f8] sm:$0xf0] }
  0xac   :  { %1722 = vmatpush.bf16.msra.mxu1 %v3665_v28  ;;  %v3586_v28 = vld [vmem:[#allocation5 + $0x2f8] sm:$0xf0] }
  0xad   :  { %1735 = vmatpush.bf16.msra.mxu2 %v3793_v29  ;;  %v3857_v29 = vor.u32 %v4905_v13, %v3856_v12  ;;  %v3589_v36 = vor.u32 %v4835_v27, %v3586_v28  ;;  %v3266_v12 = vld [vmem:[#allocation5 + $0x78] sm:$0xf0]  ;;  %v4787_v13 = vld [vmem:[#allocation5 + $0x16c] sm:$0xf]  ;;  %v3525_v27 = vor.u32 %v4819_v15, %v3522_v16 }
  0xae   :  { %1748 = vmatpush.bf16.msra.mxu3 %v3921_v33  ;;  %v4080_v33 = vld [vmem:[#allocation5 + $0x6c8] sm:$0xf]  ;;  %v3397_v23 = vor.u32 %v4787_v13, %v3394_v14  ;;  %v3250_v28 = vld [vmem:[#allocation5 + $0x58] sm:$0xf0] }
  0xaf   :  { %1710 = vmatpush.bf16.msra.mxu0 %v3521_v42  ;;  %v3442_v42 = vld [vmem:[#allocation5 + $0x1d8] sm:$0xf0]  ;;  %v4081_v45 = vor.u32 %v4961_v34, %v4080_v33 }
  0xb0   :  { %1723 = vmatpush.bf16.msra.mxu1 %v3649_v43  ;;  %v4831_v43 = vld [vmem:[#allocation5 + $0x2cc] sm:$0xf]  ;;  %v3445_v47 = vor.u32 %v4799_v39, %v3442_v42  ;;  %v4941_v39 = vld [vmem:[#allocation5 + $0x634] sm:$0xf0] }
  0xb1   :  { %1736 = vmatpush.bf16.msra.mxu2 %v3777_v44  ;;  %v3570_v44 = vld [vmem:[#allocation5 + $0x2d8] sm:$0xf0]  ;;  %v4747_v42 = vld [vmem:[#allocation5 + $0x2c] sm:$0xf]  ;;  %v4001_v50 = vor.u32 %v4941_v39, %v4000_v38 }
  0xb2   :  { %1749 = vmatpush.bf16.msra.mxu3 %v3905_v48  ;;  %v4064_v48 = vld [vmem:[#allocation5 + $0x6a8] sm:$0xf]  ;;  %v3573_v51 = vor.u32 %v4831_v43, %v3570_v44  ;;  %v3682_v38 = vld [vmem:[#allocation5 + $0x3b8] sm:$0xf0]  ;;  %v4891_v39 = vld [vmem:[#allocation5 + $0x4ac] sm:$0xf] }
  0xb3   :  { %1711 = vmatpush.bf16.msra.mxu0 %v3505_v54  ;;  %v3426_v54 = vld [vmem:[#allocation5 + $0x1b8] sm:$0xf0]  ;;  %v4065_v57 = vor.u32 %v4957_v49, %v4064_v48  ;;  %v4811_v48 = vld [vmem:[#allocation5 + $0x22c] sm:$0xf] }
  0xb4   :  { %1724 = vmatpush.bf16.msra.mxu1 %v3633_v55  ;;  %v4827_v55 = vld [vmem:[#allocation5 + $0x2ac] sm:$0xf]  ;;  %v3429_v59 = vor.u32 %v4795_v53, %v3426_v54  ;;  %v3490_v49 = vld [vmem:[#allocation5 + $0x238] sm:$0xf0] }
  0xb5   :  { %1737 = vmatpush.bf16.msra.mxu2 %v3761_v56  ;;  %v3554_v56 = vld [vmem:[#allocation5 + $0x2b8] sm:$0xf0] }
  0xb6   :  { %1750 = vmatpush.bf16.msra.mxu3 %v3889_v60  ;;  %v4048_v60 = vld [vmem:[#allocation5 + $0x688] sm:$0xf]  ;;  %v3557_v63 = vor.u32 %v4827_v55, %v3554_v56  ;;  %v4743_v55 = vld [vmem:[#allocation5 + $0xc] sm:$0xf]  ;;  %v3218_v56 = vld [vmem:[#allocation5 + $0x18] sm:$0xf0] }
  0xb7   :  { %1712 = vmatpush.bf16.msra.mxu0 %v3489_v2  ;;  %v3410_v2 = vld [vmem:[#allocation5 + $0x198] sm:$0xf0] }
  0xb8   :  { %1725 = vmatpush.bf16.msra.mxu1 %v3617_v5  ;;  %v4049_v5 = vor.u32 %v4953_v61, %v4048_v60  ;;  %v3413_v7 = vor.u32 %v4791_v1, %v3410_v2  ;;  %v3346_v60 = vld [vmem:[#allocation5 + $0x118] sm:$0xf0]  ;;  %v4807_v61 = vld [vmem:[#allocation5 + $0x20c] sm:$0xf] }
  0xb9   :  { %1738 = vmatpush.bf16.msra.mxu2 %v3745_v6  ;;  %v3285_v6 = vor.u32 %v4759_v62, %v3282_v0  ;;  %v3474_v62 = vld [vmem:[#allocation5 + $0x218] sm:$0xf0]  ;;  %v4867_v0 = vld [vmem:[#allocation5 + $0x3ec] sm:$0xf] }
  0xba   :  { %1751 = vmatpush.bf16.msra.mxu3 %v3873_v10  ;;  %v4755_v10 = vld [vmem:[#allocation5 + $0x6c] sm:$0xf]  ;;  %v3714_v1 = vld [vmem:[#allocation5 + $0x3f8] sm:$0xf0]  ;;  %v3477_v13 = vor.u32 %v4807_v61, %v3474_v62 }
  0xbb   :  { %1713 = vmatpush.bf16.msra.mxu0 %v3473_v17  ;;  %v4033_v17 = vor.u32 %v4949_v9, %v4032_v8  ;;  %v3269_v21 = vor.u32 %v4755_v10, %v3266_v12  ;;  %v5424_v34 = vpop.f32.mrf.mxu0  ;;  %v4899_v2 = vld [vmem:[#allocation5 + $0x4ec] sm:$0xf]  ;;  %v3221_v8 = vor.u32 %v4743_v55, %v3218_v56  ;;  %v3717_v14 = vor.u32 %v4867_v0, %v3714_v1  ;;  %v3794_v56 = vld [vmem:[#allocation5 + $0x498] sm:$0xf0] }
  0xbc   :  { %1726 = vmatpush.bf16.msra.mxu1 %v3601_v25  ;;  %v4945_v25 = vld [vmem:[#allocation5 + $0x654] sm:$0xf0]  ;;  %v5426_v43 = vpop.f32.mrf.mxu1  ;;  %v4963_v10 = vld [vmem:[#allocation5 + $0x6ec] sm:$0xf]  ;;  %v3845_v15 = vor.u32 %v4899_v2, %v3842_v4  ;;  %v3650_v2 = vld [vmem:[#allocation5 + $0x378] sm:$0xf0] }
  0xbd   :  { %1739 = vmatpush.bf16.msra.mxu2 %v3729_v26  ;;  %v4751_v26 = vld [vmem:[#allocation5 + $0x4c] sm:$0xf]  ;;  %v4017_v33 = vor.u32 %v4945_v25, %v4016_v24  ;;  %v3826_v25 = vld [vmem:[#allocation5 + $0x4d8] sm:$0xf0] }
  0xbe   :  { %1752 = vmatpush.bf16.msra.mxu3 %v3857_v29  ;;  %1714 = vmatmul.bf16.vlgmr.msra.gmra.mxu0 %v5390_v18  ;;  %v4783_v29 = vld [vmem:[#allocation5 + $0x14c] sm:$0xf]  ;;  %v3253_v35 = vor.u32 %v4751_v26, %v3250_v28 }
  0xbf   :  { %1758 = vmatpush.bf16.msrb.mxu0 %v4097_v30  ;;  %1727 = vmatmul.bf16.vlgmr.msra.gmra.mxu1 %v5394_v20  ;;  %v3378_v30 = vld [vmem:[#allocation5 + $0x158] sm:$0xf0]  ;;  %v4927_v26 = vld [vmem:[#allocation5 + $0x5cc] sm:$0xf] }
  0xc0   :  { %1771 = vmatpush.bf16.msrb.mxu1 %v3333_v31  ;;  %1740 = vmatmul.bf16.vlgmr.msra.gmra.mxu2 %v5404_v40  ;;  %v4815_v31 = vld [vmem:[#allocation5 + $0x24c] sm:$0xf] }
  0xc1   :  { %1784 = vmatpush.bf16.msrb.mxu2 %v3461_v32  ;;  %1753 = vmatmul.bf16.vlgmr.msra.gmra.mxu3 %v5406_v41  ;;  %v3506_v32 = vld [vmem:[#allocation5 + $0x258] sm:$0xf0]  ;;  %v4959_v28 = vld [vmem:[#allocation5 + $0x6cc] sm:$0xf] }
  0xc2   :  { %1797 = vmatpush.bf16.msrb.mxu3 %v3589_v36  ;;  %v3381_v36 = vor.u32 %v4783_v29, %v3378_v30  ;;  %v3509_v44 = vor.u32 %v4815_v31, %v3506_v32  ;;  %v4082_v29 = vld [vmem:[#allocation5 + $0x6d8] sm:$0xf0]  ;;  %v4851_v1 = vld [vmem:[#allocation5 + $0x36c] sm:$0xf] }
  0xc3   :  { %1759 = vmatpush.bf16.msrb.mxu0 %v4081_v45  ;;  %v3234_v45 = vld [vmem:[#allocation5 + $0x38] sm:$0xf0] }
  0xc4   :  { %1772 = vmatpush.bf16.msrb.mxu1 %v3317_v46  ;;  %v4779_v46 = vld [vmem:[#allocation5 + $0x12c] sm:$0xf]  ;;  %v3237_v53 = vor.u32 %v4747_v42, %v3234_v45  ;;  %v1522_v12 = vpop.f32.mrf.mxu1  ;;  %v4085_v42 = vor.u32 %v4959_v28, %v4082_v29  ;;  %v5444_v28 = vld [vmem:[#allocation7] sm:$0xf] }
  0xc5   :  { %1785 = vmatpush.bf16.msrb.mxu2 %v3445_v47  ;;  %v3362_v47 = vld [vmem:[#allocation5 + $0x138] sm:$0xf0]  ;;  %v4923_v45 = vld [vmem:[#allocation5 + $0x5ac] sm:$0xf] }
  0xc6   :  { %1798 = vmatpush.bf16.msrb.mxu3 %v3573_v51  ;;  %v3984_v51 = vld [vmem:[#allocation5 + $0x608] sm:$0xf]  ;;  %v3365_v54 = vor.u32 %v4779_v46, %v3362_v47  ;;  %v3938_v46 = vld [vmem:[#allocation5 + $0x5b8] sm:$0xf0]  ;;  %v4955_v47 = vld [vmem:[#allocation5 + $0x6ac] sm:$0xf] }
  0xc7   :  { %1760 = vmatpush.bf16.msrb.mxu0 %v4065_v57  ;;  %v4775_v57 = vld [vmem:[#allocation5 + $0x10c] sm:$0xf]  ;;  %v3985_v3 = vor.u32 %v4937_v52, %v3984_v51  ;;  %v3941_v51 = vor.u32 %v4923_v45, %v3938_v46  ;;  %v3874_v45 = vld [vmem:[#allocation5 + $0x538] sm:$0xf0] }
  0xc8   :  { %1773 = vmatpush.bf16.msrb.mxu1 %v3301_v58  ;;  %v3349_v9 = vor.u32 %v4775_v57, %v3346_v60  ;;  %v4855_v52 = vld [vmem:[#allocation5 + $0x38c] sm:$0xf]  ;;  %v4050_v60 = vld [vmem:[#allocation5 + $0x698] sm:$0xf0] }
  0xc9   :  { %1786 = vmatpush.bf16.msrb.mxu2 %v3429_v59  ;;  %v3493_v59 = vor.u32 %v4811_v48, %v3490_v49  ;;  %v4066_v48 = vld [vmem:[#allocation5 + $0x6b8] sm:$0xf0]  ;;  %v4919_v57 = vld [vmem:[#allocation5 + $0x58c] sm:$0xf] }
  0xca   :  { %1799 = vmatpush.bf16.msrb.mxu3 %v3557_v63  ;;  %v4069_v55 = vor.u32 %v4955_v47, %v4066_v48  ;;  %v4939_v46 = vld [vmem:[#allocation5 + $0x62c] sm:$0xf]  ;;  %v4002_v47 = vld [vmem:[#allocation5 + $0x638] sm:$0xf0]  ;;  %v345_v48 = vperm.slane %v5444_v28, 0 }
  0xcb   :  { %1761 = vmatpush.bf16.msrb.mxu0 %v4049_v5  ;;  %v4931_v5 = vld [vmem:[#allocation5 + $0x5ec] sm:$0xf] }
  0xcc   :  { %1774 = vmatpush.bf16.msrb.mxu1 %v3285_v6  ;;  %v3970_v6 = vld [vmem:[#allocation5 + $0x5f8] sm:$0xf0] }
  0xcd   :  { %1787 = vmatpush.bf16.msrb.mxu2 %v3413_v7  ;;  %v5428_v58 = vpop.f32.mrf.mxu2  ;;  %v1509_v7 = vpop.f32.mrf.mxu0  ;;  %v3973_v16 = vor.u32 %v4931_v5, %v3970_v6  ;;  %v3778_v5 = vld [vmem:[#allocation5 + $0x478] sm:$0xf0]  ;;  %v4915_v6 = vld [vmem:[#allocation5 + $0x56c] sm:$0xf] }
  0xce   :  { %1800 = vmatpush.bf16.msrb.mxu3 %v3541_v11  ;;  %v5430_v63 = vpop.f32.mrf.mxu3  ;;  %v4098_v11 = vld [vmem:[#allocation5 + $0x6f8] sm:$0xf0] }
  0xcf   :  { %1762 = vmatpush.bf16.msrb.mxu0 %v4033_v17  ;;  %v4863_v17 = vld [vmem:[#allocation5 + $0x3cc] sm:$0xf]  ;;  %v4101_v24 = vor.u32 %v4963_v10, %v4098_v11  ;;  %v3906_v7 = vld [vmem:[#allocation5 + $0x578] sm:$0xf0]  ;;  %v3653_v10 = vor.u32 %v4851_v1, %v3650_v2 }
  0xd0   :  { %1775 = vmatpush.bf16.msrb.mxu1 %v3269_v21  ;;  %v3698_v21 = vld [vmem:[#allocation5 + $0x3d8] sm:$0xf0]  ;;  %v3909_v12 = vor.u32 %v4915_v6, %v3906_v7 }
  0xd1   :  { %1788 = vmatpush.bf16.msrb.mxu2 %v3397_v23  ;;  %v4895_v23 = vld [vmem:[#allocation5 + $0x4cc] sm:$0xf]  ;;  %v3701_v31 = vor.u32 %v4863_v17, %v3698_v21  ;;  %v3762_v21 = vld [vmem:[#allocation5 + $0x458] sm:$0xf0] }
  0xd2   :  { %1801 = vmatpush.bf16.msrb.mxu3 %v3525_v27  ;;  %v3954_v27 = vld [vmem:[#allocation5 + $0x5d8] sm:$0xf0] }
  0xd3   :  { %1763 = vmatpush.bf16.msrb.mxu0 %v4017_v33  ;;  %v3829_v33 = vor.u32 %v4895_v23, %v3826_v25  ;;  %v4911_v23 = vld [vmem:[#allocation5 + $0x54c] sm:$0xf] }
  0xd4   :  { %1776 = vmatpush.bf16.msrb.mxu1 %v3253_v35  ;;  %v3957_v35 = vor.u32 %v4927_v26, %v3954_v27  ;;  %v4943_v25 = vld [vmem:[#allocation5 + $0x64c] sm:$0xf]  ;;  %v4018_v26 = vld [vmem:[#allocation5 + $0x658] sm:$0xf0] }
  0xd5   :  { %1789 = vmatpush.bf16.msrb.mxu2 %v3381_v36  ;;  %v1535_v30 = vpop.f32.mrf.mxu2  ;;  %v4859_v36 = vld [vmem:[#allocation5 + $0x3ac] sm:$0xf] }
  0xd6   :  { %1802 = vmatpush.bf16.msrb.mxu3 %v3509_v44  ;;  %v1548_v32 = vpop.f32.mrf.mxu3  ;;  %v3810_v44 = vld [vmem:[#allocation5 + $0x4b8] sm:$0xf0]  ;;  %v3685_v49 = vor.u32 %v4859_v36, %v3682_v38  ;;  %v4875_v38 = vld [vmem:[#allocation5 + $0x42c] sm:$0xf] }
  0xd7   :  { %1764 = vmatpush.bf16.msrb.mxu0 %v4001_v50  ;;  %v3813_v50 = vor.u32 %v4891_v39, %v3810_v44  ;;  %v3618_v36 = vld [vmem:[#allocation5 + $0x338] sm:$0xf0]  ;;  %v4021_v39 = vor.u32 %v4943_v25, %v4018_v26  ;;  %v4907_v44 = vld [vmem:[#allocation5 + $0x52c] sm:$0xf]  ;;  %v5020_v25 = vld [vmem:[#allocation8 + $0x1ac] sm:$0xf0] }
  0xd8   :  { %1777 = vmatpush.bf16.msrb.mxu1 %v3237_v53  ;;  %v3666_v53 = vld [vmem:[#allocation5 + $0x398] sm:$0xf0] }
  0xd9   :  { %1790 = vmatpush.bf16.msrb.mxu2 %v3365_v54  ;;  %v4887_v54 = vld [vmem:[#allocation5 + $0x48c] sm:$0xf] }
  0xda   :  { %1803 = vmatpush.bf16.msrb.mxu3 %v3493_v59  ;;  %v4951_v59 = vld [vmem:[#allocation5 + $0x68c] sm:$0xf] }
  0xdb   :  { %1765 = vmatpush.bf16.msrb.mxu0 %v3985_v3  ;;  %v5436_v61 = vpop.f32.mrf.mxu0  ;;  %v4883_v3 = vld [vmem:[#allocation5 + $0x46c] sm:$0xf]  ;;  %v4053_v4 = vor.u32 %v4951_v59, %v4050_v60  ;;  %v3858_v59 = vld [vmem:[#allocation5 + $0x518] sm:$0xf0] }
  0xdc   :  { %1778 = vmatpush.bf16.msrb.mxu1 %v3221_v8  ;;  %v5438_v62 = vpop.f32.mrf.mxu1  ;;  %v4947_v8 = vld [vmem:[#allocation5 + $0x66c] sm:$0xf]  ;;  %v3781_v11 = vor.u32 %v4883_v3, %v3778_v5  ;;  %v4344_v3 = vld [vmem:[#allocation8 + $0x1e0] sm:$0xf] }
  0xdd   :  { %1791 = vmatpush.bf16.msrb.mxu2 %v3349_v9  ;;  %v4034_v9 = vld [vmem:[#allocation5 + $0x678] sm:$0xf0]  ;;  %v4935_v60 = vld [vmem:[#allocation5 + $0x60c] sm:$0xf] }
  0xde   :  { %1804 = vmatpush.bf16.msrb.mxu3 %v3477_v13  ;;  %1766 = vmatmul.bf16.vlgmr.msrb.gmra.mxu0 %v5402_v37  ;;  %v4847_v13 = vld [vmem:[#allocation5 + $0x34c] sm:$0xf]  ;;  %v4037_v17 = vor.u32 %v4947_v8, %v4034_v9  ;;  %v1508_v9 = vadd.f32 %v5424_v34, %v345_v48  ;;  %v4312_v34 = vld [vmem:[#allocation8 + $0x1a0] sm:$0xf] }
  0xdf   :  { %1810 = vmatpush.bf16.msra.mxu0 %v3717_v14  ;;  %1779 = vmatmul.bf16.vlgmr.msrb.gmra.mxu1 %v5392_v19  ;;  %v3797_v19 = vor.u32 %v4887_v54, %v3794_v56  ;;  %v3634_v14 = vld [vmem:[#allocation5 + $0x358] sm:$0xf0]  ;;  %v4871_v54 = vld [vmem:[#allocation5 + $0x40c] sm:$0xf] }
  0xe0   :  { %1823 = vmatpush.bf16.msra.mxu1 %v3845_v15  ;;  %1792 = vmatmul.bf16.vlgmr.msrb.gmra.mxu2 %v5396_v22  ;;  %v3922_v22 = vld [vmem:[#allocation5 + $0x598] sm:$0xf0]  ;;  %v4879_v15 = vld [vmem:[#allocation5 + $0x44c] sm:$0xf]  ;;  %v3637_v29 = vor.u32 %v4847_v13, %v3634_v14  ;;  %v4328_v13 = vld [vmem:[#allocation8 + $0x1c0] sm:$0xf] }
  0xe1   :  { %1836 = vmatpush.bf16.msra.mxu2 %v3973_v16  ;;  %1805 = vmatmul.bf16.vlgmr.msrb.gmra.mxu3 %v5390_v18  ;;  %v3669_v18 = vor.u32 %v4855_v52, %v3666_v53  ;;  %v3925_v0 = vor.u32 %v4919_v57, %v3922_v22  ;;  %v3765_v32 = vor.u32 %v4879_v15, %v3762_v21  ;;  %v3602_v53 = vld [vmem:[#allocation5 + $0x318] sm:$0xf0]  ;;  %v4903_v22 = vld [vmem:[#allocation5 + $0x50c] sm:$0xf]  ;;  %v5024_v14 = vld [vmem:[#allocation8 + $0x1cc] sm:$0xf0] }
  0xe2   :  { %1849 = vmatpush.bf16.msra.mxu3 %v4101_v24  ;;  %v3890_v24 = vld [vmem:[#allocation5 + $0x558] sm:$0xf0]  ;;  %v3877_v52 = vor.u32 %v4907_v44, %v3874_v45  ;;  %v4005_v57 = vor.u32 %v4939_v46, %v4002_v47  ;;  %v3861_v6 = vor.u32 %v4903_v22, %v3858_v59  ;;  %v4329_v21 = vor.u32 %v5024_v14, %v4328_v13  ;;  %v4136_v44 = vld [vmem:[#allocation8 + $0x40] sm:$0xf]  ;;  %v4976_v47 = vld [vmem:[#allocation8 + $0x4c] sm:$0xf0] }
  0xe3   :  { %1811 = vmatpush.bf16.msra.mxu0 %v3701_v31  ;;  %v5440_v16 = vpop.f32.mrf.mxu2  ;;  %v1561_v30 = vpop.f32.mrf.mxu0  ;;  %v4972_v59 = vld [vmem:[#allocation8 + $0x2c] sm:$0xf0]  ;;  %v4994_v13 = vld [vmem:[#allocation8 + $0xe4] sm:$0xf]  ;;  %v4218_v14 = vld [vmem:[#allocation8 + $0xf0] sm:$0xf0] }
  0xe4   :  { %1824 = vmatpush.bf16.msra.mxu1 %v3829_v33  ;;  %v5442_v27 = vpop.f32.mrf.mxu3  ;;  %v1574_v31 = vpop.f32.mrf.mxu1  ;;  %v3893_v33 = vor.u32 %v4911_v23, %v3890_v24  ;;  %v4184_v23 = vld [vmem:[#allocation8 + $0xa0] sm:$0xf]  ;;  %v4988_v24 = vld [vmem:[#allocation8 + $0xac] sm:$0xf0] }
  0xe5   :  { %1837 = vmatpush.bf16.msra.mxu2 %v3957_v35  ;;  %v4843_v35 = vld [vmem:[#allocation5 + $0x32c] sm:$0xf]  ;;  %v4185_v26 = vor.u32 %v4988_v24, %v4184_v23  ;;  %v4168_v30 = vld [vmem:[#allocation8 + $0x80] sm:$0xf]  ;;  %v4984_v31 = vld [vmem:[#allocation8 + $0x8c] sm:$0xf0] }
  0xe6   :  { %1850 = vmatpush.bf16.msra.mxu3 %v4085_v42  ;;  %v3746_v42 = vld [vmem:[#allocation5 + $0x438] sm:$0xf0] }
  0xe7   :  { %1812 = vmatpush.bf16.msra.mxu0 %v3685_v49  ;;  %v3621_v49 = vor.u32 %v4843_v35, %v3618_v36  ;;  %v4152_v36 = vld [vmem:[#allocation8 + $0x60] sm:$0xf] }
  0xe8   :  { %1825 = vmatpush.bf16.msra.mxu1 %v3813_v50  ;;  %v4839_v50 = vld [vmem:[#allocation5 + $0x30c] sm:$0xf] }
  0xe9   :  { %1838 = vmatpush.bf16.msra.mxu2 %v3941_v51  ;;  %v3749_v51 = vor.u32 %v4875_v38, %v3746_v42  ;;  %v3605_v2 = vor.u32 %v4839_v50, %v3602_v53  ;;  %v4980_v38 = vld [vmem:[#allocation8 + $0x6c] sm:$0xf0]  ;;  %v4264_v50 = vld [vmem:[#allocation8 + $0x140] sm:$0xf] }
  0xea   :  { %1851 = vmatpush.bf16.msra.mxu3 %v4069_v55  ;;  %v3730_v55 = vld [vmem:[#allocation5 + $0x418] sm:$0xf0]  ;;  %v5012_v42 = vld [vmem:[#allocation8 + $0x16c] sm:$0xf0] }
  0xeb   :  { %1813 = vmatpush.bf16.msra.mxu0 %v3669_v18  ;;  %v1587_v56 = vpop.f32.mrf.mxu2  ;;  %v3986_v18 = vld [vmem:[#allocation5 + $0x618] sm:$0xf0]  ;;  %v3733_v5 = vor.u32 %v4871_v54, %v3730_v55  ;;  %v346_v54 = vperm.slane %v5444_v28, 1  ;;  %v4137_v55 = vor.u32 %v4976_v47, %v4136_v44 }
  0xec   :  { %1826 = vmatpush.bf16.msra.mxu1 %v3797_v19  ;;  %v4216_v19 = vld [vmem:[#allocation8 + $0xe0] sm:$0xf]  ;;  %v1600_v1 = vpop.f32.mrf.mxu3  ;;  %v3989_v7 = vor.u32 %v4935_v60, %v3986_v18 }
  0xed   :  { %1839 = vmatpush.bf16.msra.mxu2 %v3925_v0  ;;  %v4996_v0 = vld [vmem:[#allocation8 + $0xec] sm:$0xf0]  ;;  %v4120_v56 = vld [vmem:[#allocation8 + $0x20] sm:$0xf] }
  0xee   :  { %1852 = vmatpush.bf16.msra.mxu3 %v4053_v4  ;;  %v5028_v4 = vld [vmem:[#allocation8 + $0x1ec] sm:$0xf0]  ;;  %v4217_v8 = vor.u32 %v4996_v0, %v4216_v19  ;;  %v4456_v18 = vld [vmem:[#allocation8 + $0x2c0] sm:$0xf] }
  0xef   :  { %1814 = vmatpush.bf16.msra.mxu0 %v3653_v10  ;;  %v4345_v10 = vor.u32 %v5028_v4, %v4344_v3  ;;  %v5056_v19 = vld [vmem:[#allocation8 + $0x2cc] sm:$0xf0]  ;;  %v4248_v0 = vld [vmem:[#allocation8 + $0x120] sm:$0xf]  ;;  %v1599_v3 = vadd.f32 %v5442_v27, %v346_v54  ;;  %v4121_v4 = vor.u32 %v4972_v59, %v4120_v56  ;;  %v4346_v27 = vld [vmem:[#allocation8 + $0x1f0] sm:$0xf0] }
  0xf0   :  { %1827 = vmatpush.bf16.msra.mxu1 %v3781_v11  ;;  %v4200_v11 = vld [vmem:[#allocation8 + $0xc0] sm:$0xf]  ;;  %v5004_v1 = vld [vmem:[#allocation8 + $0x12c] sm:$0xf0]  ;;  %v4298_v56 = vld [vmem:[#allocation8 + $0x190] sm:$0xf0] }
  0xf1   :  { %1840 = vmatpush.bf16.msra.mxu2 %v3909_v12  ;;  %v4992_v12 = vld [vmem:[#allocation8 + $0xcc] sm:$0xf0]  ;;  %v4376_v59 = vld [vmem:[#allocation8 + $0x220] sm:$0xf] }
  0xf2   :  { %1853 = vmatpush.bf16.msra.mxu3 %v4037_v17  ;;  %v4201_v15 = vor.u32 %v4992_v12, %v4200_v11  ;;  %v1521_v17 = vadd.f32 %v5426_v43, %v1508_v9  ;;  %v4313_v43 = vor.u32 %v5020_v25, %v4312_v34  ;;  %v5052_v11 = vld [vmem:[#allocation8 + $0x2ac] sm:$0xf0]  ;;  %v4221_v25 = vor.u32 %v4994_v13, %v4218_v14  ;;  %v4474_v13 = vld [vmem:[#allocation8 + $0x2f0] sm:$0xf0]  ;;  %v5006_v14 = vld [vmem:[#allocation8 + $0x144] sm:$0xf] }
  0xf3   :  { %1815 = vmatpush.bf16.msra.mxu0 %v3637_v29  ;;  %v5000_v12 = vld [vmem:[#allocation8 + $0x10c] sm:$0xf0] }
  0xf4   :  { %1828 = vmatpush.bf16.msra.mxu1 %v3765_v32  ;;  %v1534_v29 = vadd.f32 %v5428_v58, %v1521_v17  ;;  %v5016_v32 = vld [vmem:[#allocation8 + $0x18c] sm:$0xf0]  ;;  %v4153_v58 = vor.u32 %v4980_v38, %v4152_v36  ;;  %v4408_v36 = vld [vmem:[#allocation8 + $0x260] sm:$0xf] }
  0xf5   :  { %1841 = vmatpush.bf16.msra.mxu2 %v3893_v33  ;;  %v4169_v33 = vor.u32 %v4984_v31, %v4168_v30  ;;  %v4990_v30 = vld [vmem:[#allocation8 + $0xc4] sm:$0xf]  ;;  %v4202_v31 = vld [vmem:[#allocation8 + $0xd0] sm:$0xf0]  ;;  %v5044_v38 = vld [vmem:[#allocation8 + $0x26c] sm:$0xf0] }
  0xf6   :  { %1854 = vmatpush.bf16.msra.mxu3 %v4021_v39  ;;  %v4280_v39 = vld [vmem:[#allocation8 + $0x160] sm:$0xf]  ;;  %v4409_v44 = vor.u32 %v5044_v38, %v4408_v36  ;;  %v4998_v36 = vld [vmem:[#allocation8 + $0x104] sm:$0xf]  ;;  %v4234_v38 = vld [vmem:[#allocation8 + $0x110] sm:$0xf0] }
  0xf7   :  { %1816 = vmatpush.bf16.msra.mxu0 %v3621_v49  ;;  %v4281_v46 = vor.u32 %v5012_v42, %v4280_v39  ;;  %v4472_v49 = vld [vmem:[#allocation8 + $0x2e0] sm:$0xf]  ;;  %v4986_v42 = vld [vmem:[#allocation8 + $0xa4] sm:$0xf] }
  0xf8   :  { %1829 = vmatpush.bf16.msra.mxu1 %v3749_v51  ;;  %v5008_v51 = vld [vmem:[#allocation8 + $0x14c] sm:$0xf0] }
  0xf9   :  { %1842 = vmatpush.bf16.msra.mxu2 %v3877_v52  ;;  %v4265_v22 = vor.u32 %v5008_v51, %v4264_v50  ;;  %v4982_v51 = vld [vmem:[#allocation8 + $0x84] sm:$0xf] }
  0xfa   :  { %1855 = vmatpush.bf16.msra.mxu3 %v4005_v57 }
  0xfb   :  { %1817 = vmatpush.bf16.msra.mxu0 %v3605_v2  ;;  %v1611_v35 = vpop.f32.mrf.mxu0  ;;  %v4457_v2 = vor.u32 %v5056_v19, %v4456_v18 }
  0xfc   :  { %1830 = vmatpush.bf16.msra.mxu1 %v3733_v5  ;;  %v4104_v5 = vld [vmem:[#allocation8] sm:$0xf]  ;;  %v1612_v23 = vadd.f32 %v1611_v35, %v1599_v3  ;;  %v5010_v3 = vld [vmem:[#allocation8 + $0x164] sm:$0xf] }
  0xfd   :  { %1843 = vmatpush.bf16.msra.mxu2 %v3861_v6  ;;  %v4968_v6 = vld [vmem:[#allocation8 + $0xc] sm:$0xf0] }
  0xfe   :  { %1856 = vmatpush.bf16.msra.mxu3 %v3989_v7  ;;  %1818 = vmatmul.bf16.vlgmr.msra.gmra.mxu0 %v5394_v20  ;;  %v4296_v20 = vld [vmem:[#allocation8 + $0x180] sm:$0xf]  ;;  %v4105_v24 = vor.u32 %v4968_v6, %v4104_v5  ;;  %v4974_v6 = vld [vmem:[#allocation8 + $0x44] sm:$0xf] }
  0xff   :  { %2648 = vmatpush.bf16.msrb.mxu0 %v4217_v8  ;;  %1831 = vmatmul.bf16.vlgmr.msra.gmra.mxu1 %v5404_v40  ;;  %v1547_v40 = vadd.f32 %v5430_v63, %v1534_v29  ;;  %v5060_v63 = vld [vmem:[#allocation8 + $0x2ec] sm:$0xf0]  ;;  %v4232_v8 = vld [vmem:[#allocation8 + $0x100] sm:$0xf] }
 0x100   :  { %2661 = vmatpush.bf16.msrb.mxu1 %v4345_v10  ;;  %1844 = vmatmul.bf16.vlgmr.msra.gmra.mxu2 %v5406_v41  ;;  %v4297_v41 = vor.u32 %v5016_v32, %v4296_v20  ;;  %v4473_v53 = vor.u32 %v5060_v63, %v4472_v49  ;;  %v4440_v10 = vld [vmem:[#allocation8 + $0x2a0] sm:$0xf]  ;;  %v5048_v29 = vld [vmem:[#allocation8 + $0x28c] sm:$0xf0]  ;;  %v5022_v32 = vld [vmem:[#allocation8 + $0x1c4] sm:$0xf] }
 0x101   :  { %1857 = vmatmul.bf16.vlgmr.msra.gmra.mxu3 %v5402_v37  ;;  %v5455_v37 = vpop.f32.mrf.mxu1  ;;  %v1560_v45 = vadd.f32 %v5436_v61, %v1547_v40  ;;  %v4441_v17 = vor.u32 %v5052_v11, %v4440_v10  ;;  %v4392_v49 = vld [vmem:[#allocation8 + $0x240] sm:$0xf]  ;;  %v5040_v63 = vld [vmem:[#allocation8 + $0x24c] sm:$0xf0] }
 0x102   :  { %2674 = vmatpush.bf16.msrb.mxu2 %v4473_v53  ;;  %v1625_v40 = vadd.f32 %v5455_v37, %v1612_v23  ;;  %v4170_v53 = vld [vmem:[#allocation8 + $0x90] sm:$0xf0]  ;;  %v4393_v54 = vor.u32 %v5040_v63, %v4392_v49  ;;  %v4352_v49 = vld [vmem:[#allocation8 + $0x1e8] sm:$0xf]  ;;  %v5029_v63 = vld [vmem:[#allocation8 + $0x1f4] sm:$0xf0] }
 0x103   :  { %2649 = vmatpush.bf16.msrb.mxu0 %v4201_v15  ;;  %v5458_v48 = vpop.f32.mrf.mxu2  ;;  %v1613_v57 = vpop.f32.mrf.mxu0  ;;  %v1573_v61 = vadd.f32 %v5438_v62, %v1560_v45  ;;  %v4249_v62 = vor.u32 %v5004_v1, %v4248_v0  ;;  %v5018_v45 = vld [vmem:[#allocation8 + $0x1a4] sm:$0xf]  ;;  %v4154_v1 = vld [vmem:[#allocation8 + $0x70] sm:$0xf0] }
 0x104   :  { %2662 = vmatpush.bf16.msrb.mxu1 %v4329_v21  ;;  %v5460_v52 = vpop.f32.mrf.mxu3  ;;  %v5026_v21 = vld [vmem:[#allocation8 + $0x1e4] sm:$0xf]  ;;  %v1638_v37 = vadd.f32 %v5458_v48, %v1625_v40  ;;  %v5036_v48 = vld [vmem:[#allocation8 + $0x22c] sm:$0xf0] }
 0x105   :  { %v1586_v7 = vadd.f32 %v5440_v16, %v1573_v61  ;;  %v4233_v16 = vor.u32 %v5000_v12, %v4232_v8  ;;  %v4978_v0 = vld [vmem:[#allocation8 + $0x64] sm:$0xf]  ;;  %v5032_v8 = vld [vmem:[#allocation8 + $0x20c] sm:$0xf0] }
 0x106   :  { %2675 = vmatpush.bf16.msrb.mxu2 %v4457_v2  ;;  %v1651_v57 = vadd.f32 %v5460_v52, %v1638_v37  ;;  %v4377_v2 = vor.u32 %v5036_v48, %v4376_v59  ;;  %v4157_v52 = vor.u32 %v4978_v0, %v4154_v1  ;;  %v5058_v12 = vld [vmem:[#allocation8 + $0x2e4] sm:$0xf]  ;;  %v4353_v59 = vor.u32 %v5029_v63, %v4352_v49  ;;  %v4993_v48 = vld [vmem:[#allocation8 + $0xd4] sm:$0xf0]  ;;  %v4336_v0 = vld [vmem:[#allocation8 + $0x1c8] sm:$0xf] }
 0x107   :  { %2650 = vmatpush.bf16.msrb.mxu0 %v4185_v26  ;;  %v1862_v34 = vmax.f32 %v1586_v7, 0.0  ;;  %v4424_v26 = vld [vmem:[#allocation8 + $0x280] sm:$0xf]  ;;  %v4138_v7 = vld [vmem:[#allocation8 + $0x50] sm:$0xf0] }
 0x108   :  { %2663 = vmatpush.bf16.msrb.mxu1 %v4313_v43  ;;  %v4349_v43 = vor.u32 %v5026_v21, %v4346_v27  ;;  %v4425_v20 = vor.u32 %v5048_v29, %v4424_v26  ;;  %v4141_v23 = vor.u32 %v4974_v6, %v4138_v7  ;;  %v4122_v26 = vld [vmem:[#allocation8 + $0x30] sm:$0xf0]  ;;  %v5025_v1 = vld [vmem:[#allocation8 + $0x1d4] sm:$0xf0]  ;;  %v5084_v6 = vld [vmem:[#allocation8 + $0x3ac] sm:$0xf0] }
 0x109   :  { %v1626_v60 = vpop.f32.mrf.mxu1  ;;  %v5467_v35 = vpack.c.bf16 %v1862_v34, %v1862_v34  ;;  %v4989_v7 = vld [vmem:[#allocation8 + $0xb4] sm:$0xf0]  ;;  %v4520_v49 = vld [vmem:[#allocation8 + $0x340] sm:$0xf]  ;;  %v5072_v63 = vld [vmem:[#allocation8 + $0x34c] sm:$0xf0] }
 0x10a   :  { %2676 = vmatpush.bf16.msrb.mxu2 %v4441_v17  ;;  %v4477_v17 = vor.u32 %v5058_v12, %v4474_v13 }
 0x10b   :  { %2651 = vmatpush.bf16.msrb.mxu0 %v4169_v33  ;;  %v1639_v9 = vpop.f32.mrf.mxu2  ;;  %v4330_v33 = vld [vmem:[#allocation8 + $0x1d0] sm:$0xf0] }
 0x10c   :  { %2664 = vmatpush.bf16.msrb.mxu1 %v4297_v41  ;;  %v1652_v15 = vpop.f32.mrf.mxu3  ;;  %v4205_v41 = vor.u32 %v4990_v30, %v4202_v31  ;;  %v4333_v39 = vor.u32 %v5022_v32, %v4330_v33  ;;  %v4458_v30 = vld [vmem:[#allocation8 + $0x2d0] sm:$0xf0]  ;;  %v5002_v31 = vld [vmem:[#allocation8 + $0x124] sm:$0xf] }
 0x10d   :  { %v4266_v15 = vld [vmem:[#allocation8 + $0x150] sm:$0xf0]  ;;  %v4966_v33 = vld [vmem:[#allocation8 + $0x4] sm:$0xf] }
 0x10e   :  { %2677 = vmatpush.bf16.msrb.mxu2 %v4425_v20  ;;  %v4250_v20 = vld [vmem:[#allocation8 + $0x130] sm:$0xf0] }
 0x10f   :  { %2652 = vmatpush.bf16.msrb.mxu0 %v4153_v58  ;;  %v4186_v58 = vld [vmem:[#allocation8 + $0xb0] sm:$0xf0] }
 0x110   :  { %2665 = vmatpush.bf16.msrb.mxu1 %v4281_v46  ;;  %v4314_v46 = vld [vmem:[#allocation8 + $0x1b0] sm:$0xf0]  ;;  %v4189_v47 = vor.u32 %v4986_v42, %v4186_v58  ;;  %v4600_v42 = vld [vmem:[#allocation8 + $0x3e0] sm:$0xf]  ;;  %v5092_v58 = vld [vmem:[#allocation8 + $0x3ec] sm:$0xf0] }
 0x111   :  { %v4317_v50 = vor.u32 %v5018_v45, %v4314_v46  ;;  %v4224_v45 = vld [vmem:[#allocation8 + $0xe8] sm:$0xf]  ;;  %v4997_v46 = vld [vmem:[#allocation8 + $0xf4] sm:$0xf0]  ;;  %v4601_v37 = vor.u32 %v5092_v58, %v4600_v42 }
 0x112   :  { %2678 = vmatpush.bf16.msrb.mxu2 %v4409_v44  ;;  %v5050_v44 = vld [vmem:[#allocation8 + $0x2a4] sm:$0xf]  ;;  %v4288_v42 = vld [vmem:[#allocation8 + $0x168] sm:$0xf]  ;;  %v5013_v58 = vld [vmem:[#allocation8 + $0x174] sm:$0xf0] }
 0x113   :  { %2653 = vmatpush.bf16.msrb.mxu0 %v4137_v55  ;;  %v5014_v55 = vld [vmem:[#allocation8 + $0x184] sm:$0xf]  ;;  %2687 = vmatpush.bf16.msrb.mxu3 %v4601_v37 }
 0x114   :  { %2666 = vmatpush.bf16.msrb.mxu1 %v4265_v22  ;;  %v4173_v22 = vor.u32 %v4982_v51, %v4170_v53  ;;  %v4301_v18 = vor.u32 %v5014_v55, %v4298_v56  ;;  %v4237_v55 = vor.u32 %v4998_v36, %v4234_v38  ;;  %v4225_v56 = vor.u32 %v4997_v46, %v4224_v45  ;;  %v5034_v38 = vld [vmem:[#allocation8 + $0x224] sm:$0xf] }
 0x116   :  { %2679 = vmatpush.bf16.msrb.mxu2 %v4393_v54 }
 0x117   :  { %2654 = vmatpush.bf16.msrb.mxu0 %v4121_v4  ;;  %v4282_v4 = vld [vmem:[#allocation8 + $0x170] sm:$0xf0] }
 0x118   :  { %2667 = vmatpush.bf16.msrb.mxu1 %v4249_v62  ;;  %v4360_v62 = vld [vmem:[#allocation8 + $0x200] sm:$0xf]  ;;  %v4285_v10 = vor.u32 %v5010_v3, %v4282_v4  ;;  %v4192_v4 = vld [vmem:[#allocation8 + $0xa8] sm:$0xf] }
 0x119   :  { %v4361_v11 = vor.u32 %v5032_v8, %v4360_v62  ;;  %v5042_v8 = vld [vmem:[#allocation8 + $0x264] sm:$0xf]  ;;  %v4193_v13 = vor.u32 %v4989_v7, %v4192_v4  ;;  %v5005_v4 = vld [vmem:[#allocation8 + $0x134] sm:$0xf0] }
 0x11a   :  { %2680 = vmatpush.bf16.msrb.mxu2 %v4377_v2 }
 0x11b   :  { %2655 = vmatpush.bf16.msrb.mxu0 %v4105_v24  ;;  %v1663_v61 = vpop.f32.mrf.mxu0  ;;  %v4970_v24 = vld [vmem:[#allocation8 + $0x24] sm:$0xf] }
 0x11c   :  { %2668 = vmatpush.bf16.msrb.mxu1 %v4233_v16  ;;  %v1664_v60 = vadd.f32 %v1663_v61, %v1651_v57  ;;  %v1676_v19 = vpop.f32.mrf.mxu1  ;;  %v4125_v40 = vor.u32 %v4970_v24, %v4122_v26  ;;  %v4208_v57 = vld [vmem:[#allocation8 + $0xc8] sm:$0xf]  ;;  %v4584_v61 = vld [vmem:[#allocation8 + $0x3c0] sm:$0xf]  ;;  %v4394_v26 = vld [vmem:[#allocation8 + $0x250] sm:$0xf0] }
 0x11d   :  { %v4209_v3 = vor.u32 %v4993_v48, %v4208_v57  ;;  %v4176_v24 = vld [vmem:[#allocation8 + $0x88] sm:$0xf] }
 0x11e   :  { %2656 = vmatmul.bf16.vlgmr.msrb.gmra.mxu0 %v5467_v35  ;;  %v1677_v5 = vadd.f32 %v1676_v19, %v1664_v60  ;;  %2681 = vmatpush.bf16.msrb.mxu2 %v4361_v11  ;;  %v4426_v19 = vld [vmem:[#allocation8 + $0x290] sm:$0xf0]  ;;  %v5021_v11 = vld [vmem:[#allocation8 + $0x1b4] sm:$0xf0]  ;;  %v4272_v57 = vld [vmem:[#allocation8 + $0x148] sm:$0xf] }
 0x11f   :  { %2700 = vmatpush.bf16.msra.mxu0 %v4221_v25  ;;  %v4269_v25 = vor.u32 %v5006_v14, %v4266_v15  ;;  %v4552_v14 = vld [vmem:[#allocation8 + $0x380] sm:$0xf]  ;;  %v5080_v15 = vld [vmem:[#allocation8 + $0x38c] sm:$0xf0] }
 0x120   :  { %2713 = vmatpush.bf16.msra.mxu1 %v4349_v43  ;;  %v1863_v9 = vmax.f32 %v1677_v5, 0.0  ;;  %v5054_v43 = vld [vmem:[#allocation8 + $0x2c4] sm:$0xf]  ;;  %v4568_v5 = vld [vmem:[#allocation8 + $0x3a0] sm:$0xf] }
 0x121   :  { %v4461_v32 = vor.u32 %v5054_v43, %v4458_v30  ;;  %v4569_v62 = vor.u32 %v5084_v6, %v4568_v5  ;;  %v5017_v43 = vld [vmem:[#allocation8 + $0x194] sm:$0xf0] }
 0x122   :  { %v5472_v21 = vpack.c.bf16 %v1863_v9, %v1863_v9  ;;  %2726 = vmatpush.bf16.msra.mxu2 %v4477_v17  ;;  %v4410_v9 = vld [vmem:[#allocation8 + $0x270] sm:$0xf0]  ;;  %v5038_v17 = vld [vmem:[#allocation8 + $0x244] sm:$0xf] }
 0x123   :  { %2701 = vmatpush.bf16.msra.mxu0 %v4205_v41  ;;  %v5474_v27 = vpop.f32.mrf.mxu2  ;;  %v1665_v16 = vpop.f32.mrf.mxu0  ;;  %v4106_v41 = vld [vmem:[#allocation8 + $0x10] sm:$0xf0]  ;;  %v4413_v12 = vor.u32 %v5042_v8, %v4410_v9  ;;  %v4397_v30 = vor.u32 %v5038_v17, %v4394_v26  ;;  %v4969_v8 = vld [vmem:[#allocation8 + $0x14] sm:$0xf0]  ;;  %v4488_v9 = vld [vmem:[#allocation8 + $0x300] sm:$0xf] }
 0x124   :  { %2714 = vmatpush.bf16.msra.mxu1 %v4333_v39  ;;  %v5476_v34 = vpop.f32.mrf.mxu3  ;;  %v1678_v29 = vpop.f32.mrf.mxu1  ;;  %v4253_v39 = vor.u32 %v5002_v31, %v4250_v20  ;;  %v4109_v53 = vor.u32 %v4966_v33, %v4106_v41  ;;  %v4985_v16 = vld [vmem:[#allocation8 + $0x94] sm:$0xf0]  ;;  %v4160_v20 = vld [vmem:[#allocation8 + $0x68] sm:$0xf]  ;;  %v5076_v33 = vld [vmem:[#allocation8 + $0x36c] sm:$0xf0] }
 0x125   :  { %2669 = vmatmul.bf16.vlgmr.msrb.gmra.mxu1 %v5472_v21  ;;  %v4304_v29 = vld [vmem:[#allocation8 + $0x188] sm:$0xf]  ;;  %v4177_v31 = vor.u32 %v4985_v16, %v4176_v24  ;;  %v4981_v41 = vld [vmem:[#allocation8 + $0x74] sm:$0xf0]  ;;  %v4226_v24 = vld [vmem:[#allocation8 + $0xf8] sm:$0xf0] }
 0x126   :  { %2727 = vmatpush.bf16.msra.mxu2 %v4461_v32  ;;  %v4536_v32 = vld [vmem:[#allocation8 + $0x360] sm:$0xf]  ;;  %v4161_v37 = vor.u32 %v4981_v41, %v4160_v20  ;;  %v5001_v17 = vld [vmem:[#allocation8 + $0x114] sm:$0xf0]  ;;  %v4354_v26 = vld [vmem:[#allocation8 + $0x1f8] sm:$0xf0] }
 0x127   :  { %2702 = vmatpush.bf16.msra.mxu0 %v4189_v47  ;;  %v4442_v47 = vld [vmem:[#allocation8 + $0x2b0] sm:$0xf0]  ;;  %v4537_v36 = vor.u32 %v5076_v33, %v4536_v32  ;;  %v5086_v32 = vld [vmem:[#allocation8 + $0x3c4] sm:$0xf]  ;;  %v4991_v41 = vld [vmem:[#allocation8 + $0xcc] sm:$0xf] }
 0x128   :  { %2715 = vmatpush.bf16.msra.mxu1 %v4317_v50  ;;  %v4445_v51 = vor.u32 %v5050_v44, %v4442_v47  ;;  %v4144_v47 = vld [vmem:[#allocation8 + $0x48] sm:$0xf]  ;;  %v4586_v33 = vld [vmem:[#allocation8 + $0x3d0] sm:$0xf0] }
 0x12a   :  { %2728 = vmatpush.bf16.msra.mxu2 %v4445_v51  ;;  %v4977_v51 = vld [vmem:[#allocation8 + $0x54] sm:$0xf0] }
 0x12b   :  { %2703 = vmatpush.bf16.msra.mxu0 %v4173_v22  ;;  %v1691_v50 = vpop.f32.mrf.mxu2  ;;  %v5088_v22 = vld [vmem:[#allocation8 + $0x3cc] sm:$0xf0]  ;;  %v4145_v48 = vor.u32 %v4977_v51, %v4144_v47  ;;  %v5019_v51 = vld [vmem:[#allocation8 + $0x1ac] sm:$0xf] }
 0x12c   :  { %2716 = vmatpush.bf16.msra.mxu1 %v4301_v18  ;;  %v1704_v54 = vpop.f32.mrf.mxu3  ;;  %v4585_v60 = vor.u32 %v5088_v22, %v4584_v61  ;;  %v5046_v18 = vld [vmem:[#allocation8 + $0x284] sm:$0xf]  ;;  %v4289_v50 = vor.u32 %v5013_v58, %v4288_v42  ;;  %v5009_v61 = vld [vmem:[#allocation8 + $0x154] sm:$0xf0]  ;;  %v4338_v42 = vld [vmem:[#allocation8 + $0x1d8] sm:$0xf0] }
 0x12d   :  { %v4429_v2 = vor.u32 %v5046_v18, %v4426_v19  ;;  %v5030_v54 = vld [vmem:[#allocation8 + $0x204] sm:$0xf]  ;;  %v4504_v18 = vld [vmem:[#allocation8 + $0x320] sm:$0xf]  ;;  %v4273_v19 = vor.u32 %v5009_v61, %v4272_v57  ;;  %v4983_v61 = vld [vmem:[#allocation8 + $0x8c] sm:$0xf] }
 0x12e   :  { %2688 = vmatpush.bf16.msrb.mxu3 %v4585_v60 }
 0x12f   :  { %2704 = vmatpush.bf16.msra.mxu0 %v4157_v52  ;;  %v4337_v52 = vor.u32 %v5025_v1, %v4336_v0  ;;  %2729 = vmatpush.bf16.msra.mxu2 %v4429_v2  ;;  %v4128_v0 = vld [vmem:[#allocation8 + $0x28] sm:$0xf]  ;;  %v4973_v1 = vld [vmem:[#allocation8 + $0x34] sm:$0xf0]  ;;  %v5068_v2 = vld [vmem:[#allocation8 + $0x32c] sm:$0xf0] }
 0x130   :  { %2717 = vmatpush.bf16.msra.mxu1 %v4285_v10  ;;  %v4320_v10 = vld [vmem:[#allocation8 + $0x1a8] sm:$0xf]  ;;  %v4505_v6 = vor.u32 %v5068_v2, %v4504_v18  ;;  %v5015_v18 = vld [vmem:[#allocation8 + $0x18c] sm:$0xf]  ;;  %v4538_v2 = vld [vmem:[#allocation8 + $0x370] sm:$0xf0] }
 0x132   :  { %2689 = vmatpush.bf16.msrb.mxu3 %v4569_v62  ;;  %v4129_v62 = vor.u32 %v4973_v1, %v4128_v0  ;;  %v5074_v1 = vld [vmem:[#allocation8 + $0x364] sm:$0xf] }
 0x133   :  { %2705 = vmatpush.bf16.msra.mxu0 %v4141_v23  ;;  %v4321_v23 = vor.u32 %v5021_v11, %v4320_v10  ;;  %2730 = vmatpush.bf16.msra.mxu2 %v4413_v12  ;;  %v5064_v10 = vld [vmem:[#allocation8 + $0x30c] sm:$0xf0]  ;;  %v4240_v12 = vld [vmem:[#allocation8 + $0x108] sm:$0xf] }
 0x134   :  { %2718 = vmatpush.bf16.msra.mxu1 %v4269_v25  ;;  %v4553_v25 = vor.u32 %v5080_v15, %v4552_v14  ;;  %v5090_v14 = vld [vmem:[#allocation8 + $0x3e4] sm:$0xf]  ;;  %v4602_v15 = vld [vmem:[#allocation8 + $0x3f0] sm:$0xf0] }
 0x135   :  { %v4605_v16 = vor.u32 %v5090_v14, %v4602_v15  ;;  %v4975_v15 = vld [vmem:[#allocation8 + $0x4c] sm:$0xf] }
 0x136   :  { %2690 = vmatpush.bf16.msrb.mxu3 %v4553_v25  ;;  %v5027_v25 = vld [vmem:[#allocation8 + $0x1ec] sm:$0xf] }
 0x137   :  { %2706 = vmatpush.bf16.msra.mxu0 %v4125_v40  ;;  %v4305_v40 = vor.u32 %v5017_v43, %v4304_v29  ;;  %2731 = vmatpush.bf16.msra.mxu2 %v4397_v30 }
 0x138   :  { %2719 = vmatpush.bf16.msra.mxu1 %v4253_v39  ;;  %v4378_v39 = vld [vmem:[#allocation8 + $0x230] sm:$0xf0] }
 0x139   :  { %v4381_v45 = vor.u32 %v5034_v38, %v4378_v39  ;;  %v4589_v38 = vor.u32 %v5086_v32, %v4586_v33  ;;  %v5023_v39 = vld [vmem:[#allocation8 + $0x1cc] sm:$0xf] }
 0x13a   :  { %2691 = vmatpush.bf16.msrb.mxu3 %v4537_v36  ;;  %v4210_v36 = vld [vmem:[#allocation8 + $0xd8] sm:$0xf0] }
 0x13b   :  { %2707 = vmatpush.bf16.msra.mxu0 %v4109_v53  ;;  %v5481_v44 = vpop.f32.mrf.mxu0  ;;  %2732 = vmatpush.bf16.msra.mxu2 %v4381_v45  ;;  %v4521_v53 = vor.u32 %v5072_v63, %v4520_v49  ;;  %v4213_v58 = vor.u32 %v4991_v41, %v4210_v36  ;;  %v5082_v45 = vld [vmem:[#allocation8 + $0x3a4] sm:$0xf]  ;;  %v4341_v49 = vor.u32 %v5023_v39, %v4338_v42  ;;  %v4987_v63 = vld [vmem:[#allocation8 + $0xac] sm:$0xf] }
 0x13c   :  { %2720 = vmatpush.bf16.msra.mxu1 %v4237_v55  ;;  %v5483_v46 = vpop.f32.mrf.mxu1  ;;  %v4362_v55 = vld [vmem:[#allocation8 + $0x210] sm:$0xf0]  ;;  %v5003_v36 = vld [vmem:[#allocation8 + $0x12c] sm:$0xf] }
 0x13d   :  { %v4365_v22 = vor.u32 %v5030_v54, %v4362_v55  ;;  %v5078_v54 = vld [vmem:[#allocation8 + $0x384] sm:$0xf]  ;;  %v4554_v55 = vld [vmem:[#allocation8 + $0x390] sm:$0xf0] }
 0x13e   :  { %2708 = vmatmul.bf16.vlgmr.msra.gmra.mxu0 %v5467_v35  ;;  %2692 = vmatpush.bf16.msrb.mxu3 %v4521_v53  ;;  %v4322_v53 = vld [vmem:[#allocation8 + $0x1b8] sm:$0xf0] }
 0x13f   :  { %2752 = vmatpush.bf16.msrb.mxu0 %v4225_v56  ;;  %2721 = vmatmul.bf16.vlgmr.msra.gmra.mxu1 %v5472_v21  ;;  %v347_v56 = vperm.slane %v5444_v28, 2  ;;  %v4256_v28 = vld [vmem:[#allocation8 + $0x128] sm:$0xf] }
 0x140   :  { %2765 = vmatpush.bf16.msrb.mxu1 %v4353_v59  ;;  %2733 = vmatpush.bf16.msra.mxu2 %v4365_v22  ;;  %v4257_v11 = vor.u32 %v5005_v4, %v4256_v28  ;;  %v4178_v22 = vld [vmem:[#allocation8 + $0x98] sm:$0xf0]  ;;  %v4979_v4 = vld [vmem:[#allocation8 + $0x6c] sm:$0xf] }
 0x141   :  { %v4181_v0 = vor.u32 %v4983_v61, %v4178_v22 }
 0x142   :  { %2693 = vmatpush.bf16.msrb.mxu3 %v4505_v6 }
 0x143   :  { %2753 = vmatpush.bf16.msrb.mxu0 %v4209_v3  ;;  %v5486_v59 = vpop.f32.mrf.mxu2  ;;  %v1690_v3 = vadd.f32 %v5474_v27, %v347_v56  ;;  %v1717_v5 = vpop.f32.mrf.mxu0 }
 0x144   :  { %2766 = vmatpush.bf16.msrb.mxu1 %v4337_v52  ;;  %v5488_v60 = vpop.f32.mrf.mxu3  ;;  %v4112_v52 = vld [vmem:[#allocation8 + $0x8] sm:$0xf]  ;;  %v1730_v7 = vpop.f32.mrf.mxu1  ;;  %v4162_v5 = vld [vmem:[#allocation8 + $0x78] sm:$0xf0] }
 0x145   :  { %v1703_v27 = vadd.f32 %v5476_v34, %v1690_v3  ;;  %v4113_v43 = vor.u32 %v4969_v8, %v4112_v52  ;;  %v4357_v34 = vor.u32 %v5027_v25, %v4354_v26  ;;  %v5011_v52 = vld [vmem:[#allocation8 + $0x16c] sm:$0xf]  ;;  %v4290_v7 = vld [vmem:[#allocation8 + $0x178] sm:$0xf0]  ;;  %v4480_v8 = vld [vmem:[#allocation8 + $0x2e8] sm:$0xf] }
 0x146   :  { %v4464_v26 = vld [vmem:[#allocation8 + $0x2c8] sm:$0xf] }
 0x147   :  { %2754 = vmatpush.bf16.msrb.mxu0 %v4193_v13  ;;  %v4489_v13 = vor.u32 %v5064_v10, %v4488_v9  ;;  %v5061_v9 = vld [vmem:[#allocation8 + $0x2f4] sm:$0xf0]  ;;  %v4165_v10 = vor.u32 %v4979_v4, %v4162_v5  ;;  %v4400_v5 = vld [vmem:[#allocation8 + $0x248] sm:$0xf] }
 0x148   :  { %2767 = vmatpush.bf16.msrb.mxu1 %v4321_v23  ;;  %v4995_v23 = vld [vmem:[#allocation8 + $0xec] sm:$0xf] }
 0x149   :  { %2694 = vmatpush.bf16.msrb.mxu3 %v4489_v13  ;;  %v4229_v20 = vor.u32 %v4995_v23, %v4226_v24  ;;  %v4522_v13 = vld [vmem:[#allocation8 + $0x350] sm:$0xf0]  ;;  %v5007_v23 = vld [vmem:[#allocation8 + $0x14c] sm:$0xf]  ;;  %v4274_v24 = vld [vmem:[#allocation8 + $0x158] sm:$0xf0] }
 0x14b   :  { %2755 = vmatpush.bf16.msrb.mxu0 %v4177_v31  ;;  %v1743_v29 = vpop.f32.mrf.mxu2  ;;  %v4241_v31 = vor.u32 %v5001_v17, %v4240_v12  ;;  %v5070_v12 = vld [vmem:[#allocation8 + $0x344] sm:$0xf]  ;;  %v4481_v17 = vor.u32 %v5061_v9, %v4480_v8 }
 0x14c   :  { %2768 = vmatpush.bf16.msrb.mxu1 %v4305_v40  ;;  %v1756_v30 = vpop.f32.mrf.mxu3  ;;  %v1716_v40 = vadd.f32 %v5481_v44, %v1703_v27  ;;  %v4146_v27 = vld [vmem:[#allocation8 + $0x58] sm:$0xf0]  ;;  %v5057_v29 = vld [vmem:[#allocation8 + $0x2d4] sm:$0xf0] }
 0x14d   :  { %2739 = vmatpush.bf16.msra.mxu3 %v4605_v16  ;;  %v4525_v16 = vor.u32 %v5070_v12, %v4522_v13  ;;  %v5066_v30 = vld [vmem:[#allocation8 + $0x324] sm:$0xf]  ;;  %v4465_v41 = vor.u32 %v5057_v29, %v4464_v26  ;;  %v4368_v12 = vld [vmem:[#allocation8 + $0x208] sm:$0xf]  ;;  %v5033_v13 = vld [vmem:[#allocation8 + $0x214] sm:$0xf0] }
 0x14e   :  { %v1729_v47 = vadd.f32 %v5483_v46, %v1716_v40  ;;  %v4325_v46 = vor.u32 %v5019_v51, %v4322_v53  ;;  %v4971_v40 = vld [vmem:[#allocation8 + $0x2c] sm:$0xf] }
 0x14f   :  { %2756 = vmatpush.bf16.msrb.mxu0 %v4161_v37  ;;  %v4570_v37 = vld [vmem:[#allocation8 + $0x3b0] sm:$0xf0]  ;;  %v4967_v51 = vld [vmem:[#allocation8 + $0xc] sm:$0xf] }
 0x150   :  { %2769 = vmatpush.bf16.msrb.mxu1 %v4289_v50  ;;  %v4194_v50 = vld [vmem:[#allocation8 + $0xb8] sm:$0xf0]  ;;  %v4573_v44 = vor.u32 %v5082_v45, %v4570_v37  ;;  %v1742_v57 = vadd.f32 %v5486_v59, %v1729_v47  ;;  %v4541_v59 = vor.u32 %v5074_v1, %v4538_v2  ;;  %v5053_v45 = vld [vmem:[#allocation8 + $0x2b4] sm:$0xf0]  ;;  %v4416_v2 = vld [vmem:[#allocation8 + $0x268] sm:$0xf] }
 0x151   :  { %2740 = vmatpush.bf16.msra.mxu3 %v4589_v38  ;;  %v4197_v56 = vor.u32 %v4987_v63, %v4194_v50  ;;  %v4258_v38 = vld [vmem:[#allocation8 + $0x138] sm:$0xf0]  ;;  %v4490_v63 = vld [vmem:[#allocation8 + $0x310] sm:$0xf0] }
 0x152   :  { %v1755_v3 = vadd.f32 %v5488_v60, %v1742_v57  ;;  %v4293_v60 = vor.u32 %v5011_v52, %v4290_v7  ;;  %v4261_v50 = vor.u32 %v5003_v36, %v4258_v38  ;;  %v4432_v57 = vld [vmem:[#allocation8 + $0x288] sm:$0xf]  ;;  %v5047_v38 = vld [vmem:[#allocation8 + $0x28c] sm:$0xf] }
 0x153   :  { %2757 = vmatpush.bf16.msrb.mxu0 %v4145_v48  ;;  %v4557_v48 = vor.u32 %v5078_v54, %v4554_v55  ;;  %v4999_v54 = vld [vmem:[#allocation8 + $0x10c] sm:$0xf]  ;;  %v4242_v55 = vld [vmem:[#allocation8 + $0x118] sm:$0xf0]  ;;  %v4384_v7 = vld [vmem:[#allocation8 + $0x228] sm:$0xf] }
 0x154   :  { %2770 = vmatpush.bf16.msrb.mxu1 %v4273_v19  ;;  %v4306_v19 = vld [vmem:[#allocation8 + $0x198] sm:$0xf0]  ;;  %v4245_v22 = vor.u32 %v4999_v54, %v4242_v55 }
 0x155   :  { %2741 = vmatpush.bf16.msra.mxu3 %v4573_v44  ;;  %v4309_v28 = vor.u32 %v5015_v18, %v4306_v19  ;;  %v4114_v44 = vld [vmem:[#allocation8 + $0x18] sm:$0xf0] }
 0x156   :  { %v4117_v61 = vor.u32 %v4967_v51, %v4114_v44  ;;  %v4418_v51 = vld [vmem:[#allocation8 + $0x278] sm:$0xf0]  ;;  %v4576_v44 = vld [vmem:[#allocation8 + $0x3a8] sm:$0xf] }
 0x157   :  { %2758 = vmatpush.bf16.msrb.mxu0 %v4129_v62 }
 0x158   :  { %2771 = vmatpush.bf16.msrb.mxu1 %v4257_v11 }
 0x159   :  { %2742 = vmatpush.bf16.msra.mxu3 %v4557_v48 }
 0x15b   :  { %2759 = vmatpush.bf16.msrb.mxu0 %v4113_v43  ;;  %v1767_v6 = vpop.f32.mrf.mxu0  ;;  %v4149_v43 = vor.u32 %v4975_v15, %v4146_v27  ;;  %v4369_v15 = vor.u32 %v5033_v13, %v4368_v12  ;;  %v5055_v27 = vld [vmem:[#allocation8 + $0x2cc] sm:$0xf]  ;;  %v4496_v13 = vld [vmem:[#allocation8 + $0x308] sm:$0xf] }
 0x15c   :  { %2772 = vmatpush.bf16.msrb.mxu1 %v4241_v31  ;;  %v1768_v62 = vadd.f32 %v1767_v6, %v1755_v3  ;;  %v5498_v11 = vpop.f32.mrf.mxu1  ;;  %v4506_v31 = vld [vmem:[#allocation8 + $0x330] sm:$0xf0]  ;;  %v5045_v3 = vld [vmem:[#allocation8 + $0x274] sm:$0xf0] }
 0x15d   :  { %2743 = vmatpush.bf16.msra.mxu3 %v4541_v59  ;;  %v4509_v42 = vor.u32 %v5066_v30, %v4506_v31  ;;  %v5041_v59 = vld [vmem:[#allocation8 + $0x254] sm:$0xf0]  ;;  %v5051_v31 = vld [vmem:[#allocation8 + $0x2ac] sm:$0xf] }
 0x15e   :  { %2760 = vmatmul.bf16.vlgmr.msrb.gmra.mxu0 %v5467_v35  ;;  %v1864_v14 = vmax.f32 %v1768_v62, 0.0  ;;  %v4401_v6 = vor.u32 %v5041_v59, %v4400_v5  ;;  %v5037_v62 = vld [vmem:[#allocation8 + $0x234] sm:$0xf0]  ;;  %v4528_v59 = vld [vmem:[#allocation8 + $0x348] sm:$0xf] }
 0x15f   :  { %2804 = vmatpush.bf16.msra.mxu0 %v4229_v20  ;;  %2773 = vmatmul.bf16.vlgmr.msrb.gmra.mxu1 %v5472_v21  ;;  %v4277_v20 = vor.u32 %v5007_v23, %v4274_v24  ;;  %v4385_v8 = vor.u32 %v5037_v62, %v4384_v7  ;;  %v4512_v62 = vld [vmem:[#allocation8 + $0x328] sm:$0xf] }
 0x160   :  { %2817 = vmatpush.bf16.msra.mxu1 %v4357_v34  ;;  %v5500_v25 = vpack.c.bf16 %v1864_v14, %v1864_v14  ;;  %v4130_v34 = vld [vmem:[#allocation8 + $0x38] sm:$0xf0]  ;;  %v5059_v14 = vld [vmem:[#allocation8 + $0x2ec] sm:$0xf] }
 0x161   :  { %2744 = vmatpush.bf16.msra.mxu3 %v4525_v16  ;;  %v4133_v37 = vor.u32 %v4971_v40, %v4130_v34  ;;  %v5093_v40 = vld [vmem:[#allocation8 + $0x3f4] sm:$0xf0] }
 0x162   :  { %2682 = vmatmul.bf16.vlgmr.msrb.gmra.mxu2 %v5500_v25 }
 0x163   :  { %2805 = vmatpush.bf16.msra.mxu0 %v4213_v58  ;;  %v1793_v32 = vpop.f32.mrf.mxu2  ;;  %2778 = vmatpush.bf16.msrb.mxu2 %v4481_v17  ;;  %v1769_v39 = vpop.f32.mrf.mxu0  ;;  %v4448_v58 = vld [vmem:[#allocation8 + $0x2a8] sm:$0xf]  ;;  %v4466_v17 = vld [vmem:[#allocation8 + $0x2d8] sm:$0xf0] }
 0x164   :  { %2818 = vmatpush.bf16.msra.mxu1 %v4341_v49  ;;  %v1806_v33 = vpop.f32.mrf.mxu3  ;;  %v1782_v47 = vpop.f32.mrf.mxu1  ;;  %v5062_v49 = vld [vmem:[#allocation8 + $0x304] sm:$0xf]  ;;  %v4449_v53 = vor.u32 %v5053_v45, %v4448_v58  ;;  %v4434_v39 = vld [vmem:[#allocation8 + $0x298] sm:$0xf0]  ;;  %v4592_v58 = vld [vmem:[#allocation8 + $0x3c8] sm:$0xf] }
 0x165   :  { %2745 = vmatpush.bf16.msra.mxu3 %v4509_v42  ;;  %v5089_v45 = vld [vmem:[#allocation8 + $0x3d4] sm:$0xf0] }
 0x167   :  { %2806 = vmatpush.bf16.msra.mxu0 %v4197_v56  ;;  %2779 = vmatpush.bf16.msrb.mxu2 %v4465_v41  ;;  %v4493_v56 = vor.u32 %v5062_v49, %v4490_v63  ;;  %v4437_v49 = vor.u32 %v5047_v38, %v4434_v39  ;;  %v4593_v63 = vor.u32 %v5089_v45, %v4592_v58  ;;  %v5071_v38 = vld [vmem:[#allocation8 + $0x34c] sm:$0xf]  ;;  %v4530_v39 = vld [vmem:[#allocation8 + $0x358] sm:$0xf0] }
 0x168   :  { %2819 = vmatpush.bf16.msra.mxu1 %v4325_v46  ;;  %v5049_v46 = vld [vmem:[#allocation8 + $0x294] sm:$0xf0]  ;;  %v4533_v45 = vor.u32 %v5071_v38, %v4530_v39 }
 0x169   :  { %v4433_v19 = vor.u32 %v5049_v46, %v4432_v57  ;;  %2746 = vmatpush.bf16.msra.mxu3 %v4493_v56  ;;  %v5039_v56 = vld [vmem:[#allocation8 + $0x24c] sm:$0xf]  ;;  %v4402_v57 = vld [vmem:[#allocation8 + $0x258] sm:$0xf0]  ;;  %v4560_v46 = vld [vmem:[#allocation8 + $0x388] sm:$0xf] }
 0x16a   :  { %v5124_v39 = vld [vmem:[#allocation11 + $0xf0] sm:$0xff] }
 0x16b   :  { %2807 = vmatpush.bf16.msra.mxu0 %v4181_v0  ;;  %v1795_v48 = vpop.f32.mrf.mxu2  ;;  %2780 = vmatpush.bf16.msrb.mxu2 %v4449_v53  ;;  %v5142_v0 = vld [vmem:[#allocation7] sm:$0xf]  ;;  %v5085_v53 = vld [vmem:[#allocation8 + $0x3b4] sm:$0xf0] }
 0x16c   :  { %2820 = vmatpush.bf16.msra.mxu1 %v4309_v28  ;;  %v1808_v18 = vpop.f32.mrf.mxu3  ;;  %v348_v1 = vperm.slane %v5142_v0, 3  ;;  %v4417_v28 = vor.u32 %v5045_v3, %v4416_v2  ;;  %v4577_v55 = vor.u32 %v5085_v53, %v4576_v44  ;;  %v4544_v0 = vld [vmem:[#allocation8 + $0x368] sm:$0xf]  ;;  %v5063_v44 = vld [vmem:[#allocation8 + $0x30c] sm:$0xf] }
 0x16d   :  { %v5035_v18 = vld [vmem:[#allocation8 + $0x22c] sm:$0xf]  ;;  %v4498_v53 = vld [vmem:[#allocation8 + $0x318] sm:$0xf0] }
 0x16e   :  { %v1781_v4 = vadd.f32 %v5498_v11, %v348_v1  ;;  %v5077_v1 = vld [vmem:[#allocation8 + $0x374] sm:$0xf0] }
 0x16f   :  { %2808 = vmatpush.bf16.msra.mxu0 %v4165_v10  ;;  %2781 = vmatpush.bf16.msrb.mxu2 %v4433_v19  ;;  %v4386_v19 = vld [vmem:[#allocation8 + $0x238] sm:$0xf0]  ;;  %v4545_v3 = vor.u32 %v5077_v1, %v4544_v0  ;;  %v5099_v0 = vld [vmem:[#allocation11 + $0x28] sm:$0xff] }
 0x170   :  { %2821 = vmatpush.bf16.msra.mxu1 %v4293_v60  ;;  %v1794_v52 = vadd.f32 %v1793_v32, %v1781_v4  ;;  %v4389_v2 = vor.u32 %v5035_v18, %v4386_v19  ;;  %v4370_v4 = vld [vmem:[#allocation8 + $0x218] sm:$0xf0]  ;;  %v5100_v18 = vld [vmem:[#allocation11 + $0x30] sm:$0xff] }
 0x172   :  { %2734 = vmatmul.bf16.vlgmr.msra.gmra.mxu2 %v5500_v25  ;;  %v1807_v9 = vadd.f32 %v1806_v33, %v1794_v52  ;;  %v4608_v33 = vld [vmem:[#allocation8 + $0x3e8] sm:$0xf] }
 0x173   :  { %2809 = vmatpush.bf16.msra.mxu0 %v4149_v43  ;;  %2782 = vmatpush.bf16.msrb.mxu2 %v4417_v28  ;;  %v4469_v43 = vor.u32 %v5055_v27, %v4466_v17  ;;  %v4609_v36 = vor.u32 %v5093_v40, %v4608_v33  ;;  %v5031_v28 = vld [vmem:[#allocation8 + $0x20c] sm:$0xf]  ;;  %v4594_v17 = vld [vmem:[#allocation8 + $0x3d8] sm:$0xf0] }
 0x174   :  { %2822 = vmatpush.bf16.msra.mxu1 %v4277_v20  ;;  %v4450_v20 = vld [vmem:[#allocation8 + $0x2b8] sm:$0xf0]  ;;  %v4373_v52 = vor.u32 %v5031_v28, %v4370_v4  ;;  %v5087_v27 = vld [vmem:[#allocation8 + $0x3cc] sm:$0xf]  ;;  %v5096_v4 = vld [vmem:[#allocation11 + $0x10] sm:$0xff] }
 0x175   :  { %v4453_v41 = vor.u32 %v5051_v31, %v4450_v20  ;;  %v4562_v31 = vld [vmem:[#allocation8 + $0x398] sm:$0xf0]  ;;  %v5075_v33 = vld [vmem:[#allocation8 + $0x36c] sm:$0xf] }
 0x176   :  { %v4546_v40 = vld [vmem:[#allocation8 + $0x378] sm:$0xf0] }
 0x177   :  { %2810 = vmatpush.bf16.msra.mxu0 %v4133_v37  ;;  %2783 = vmatpush.bf16.msrb.mxu2 %v4401_v6  ;;  %v5073_v6 = vld [vmem:[#allocation8 + $0x354] sm:$0xf0] }
 0x178   :  { %2823 = vmatpush.bf16.msra.mxu1 %v4261_v50  ;;  %v5043_v50 = vld [vmem:[#allocation8 + $0x26c] sm:$0xf]  ;;  %v4529_v7 = vor.u32 %v5073_v6, %v4528_v59 }
 0x179   :  { %v4421_v54 = vor.u32 %v5043_v50, %v4418_v51  ;;  %v5095_v6 = vld [vmem:[#allocation11 + $0x8] sm:$0xff] }
 0x17b   :  { %2811 = vmatpush.bf16.msra.mxu0 %v4117_v61  ;;  %v1819_v10 = vpop.f32.mrf.mxu0  ;;  %2784 = vmatpush.bf16.msrb.mxu2 %v4385_v8  ;;  %v5081_v61 = vld [vmem:[#allocation8 + $0x394] sm:$0xf0] }
 0x17c   :  { %2824 = vmatpush.bf16.msra.mxu1 %v4245_v22  ;;  %v1832_v11 = vpop.f32.mrf.mxu1  ;;  %v1820_v60 = vadd.f32 %v1819_v10, %v1807_v9  ;;  %v4405_v22 = vor.u32 %v5039_v56, %v4402_v57  ;;  %v4561_v48 = vor.u32 %v5081_v61, %v4560_v46  ;;  %v5069_v8 = vld [vmem:[#allocation8 + $0x334] sm:$0xf0]  ;;  %v5512_v10 = vld [vmem:[#allocation10] sm:$0xf] }
 0x17d   :  { %v4513_v9 = vor.u32 %v5069_v8, %v4512_v62  ;;  %v2002_v56 = vperm.slane %v5512_v10, 2  ;;  %v5101_v46 = vld [vmem:[#allocation11 + $0x38] sm:$0xff]  ;;  %v2003_v59 = vperm.slane %v5512_v10, 3 }
 0x17e   :  { %2812 = vmatmul.bf16.vlgmr.msra.gmra.mxu0 %v5467_v35  ;;  %v4482_v35 = vld [vmem:[#allocation8 + $0x2f8] sm:$0xf0]  ;;  %v1833_v23 = vadd.f32 %v1832_v11, %v1820_v60  ;;  %v5065_v11 = vld [vmem:[#allocation8 + $0x314] sm:$0xf0]  ;;  %v2000_v60 = vperm.slane %v5512_v10, 0 }
 0x17f   :  { %2825 = vmatmul.bf16.vlgmr.msra.gmra.mxu1 %v5472_v21  ;;  %v4485_v21 = vor.u32 %v5059_v14, %v4482_v35  ;;  %2785 = vmatpush.bf16.msrb.mxu2 %v4369_v15  ;;  %v5091_v14 = vld [vmem:[#allocation8 + $0x3ec] sm:$0xf]  ;;  %v4610_v35 = vld [vmem:[#allocation8 + $0x3f8] sm:$0xf0]  ;;  %v4497_v15 = vor.u32 %v5065_v11, %v4496_v13  ;;  %v5106_v13 = vld [vmem:[#allocation11 + $0x60] sm:$0xff] }
 0x180   :  { %3124 = vmatpush.bf16.msrb.mxu0 %v5101_v46 }
 0x182   :  { %2786 = vmatmul.bf16.vlgmr.msrb.gmra.mxu2 %v5500_v25 }
 0x183   :  { %v1845_v24 = vpop.f32.mrf.mxu2  ;;  %2830 = vmatpush.bf16.msra.mxu2 %v4485_v21  ;;  %v1821_v29 = vpop.f32.mrf.mxu0  ;;  %v4613_v21 = vor.u32 %v5091_v14, %v4610_v35  ;;  %v5105_v14 = vld [vmem:[#allocation11 + $0x58] sm:$0xff] }
 0x184   :  { %v1846_v16 = vadd.f32 %v1845_v24, %v1833_v23  ;;  %v1858_v26 = vpop.f32.mrf.mxu3  ;;  %v1834_v30 = vpop.f32.mrf.mxu1  ;;  %v5083_v29 = vld [vmem:[#allocation8 + $0x3ac] sm:$0xf]  ;;  %3125 = vmatpush.bf16.msrb.mxu0 %v5100_v18  ;;  %v5117_v35 = vld [vmem:[#allocation11 + $0xb8] sm:$0xff] }
 0x185   :  { %v5079_v30 = vld [vmem:[#allocation8 + $0x38c] sm:$0xf] }
 0x186   :  { %v1859_v32 = vadd.f32 %v1858_v26, %v1846_v16  ;;  %v4597_v16 = vor.u32 %v5087_v27, %v4594_v17  ;;  %v5103_v17 = vld [vmem:[#allocation11 + $0x48] sm:$0xff] }
 0x187   :  { %2831 = vmatpush.bf16.msra.mxu2 %v4469_v43  ;;  %v4578_v43 = vld [vmem:[#allocation8 + $0x3b8] sm:$0xf0] }
 0x188   :  { %v1865_v34 = vmax.f32 %v1859_v32, 0.0  ;;  %v4565_v32 = vor.u32 %v5079_v30, %v4562_v31  ;;  %3126 = vmatpush.bf16.msrb.mxu0 %v5099_v0 }
 0x18a   :  { %v5508_v42 = vpack.c.bf16 %v1865_v34, %v1865_v34  ;;  %v2001_v34 = vperm.slane %v5512_v10, 1  ;;  %v5116_v10 = vld [vmem:[#allocation11 + $0xb0] sm:$0xff] }
 0x18b   :  { %v1847_v37 = vpop.f32.mrf.mxu2  ;;  %2832 = vmatpush.bf16.msra.mxu2 %v4453_v41  ;;  %v4549_v41 = vor.u32 %v5075_v33, %v4546_v40 }
 0x18c   :  { %v1860_v47 = vpop.f32.mrf.mxu3  ;;  %2695 = vmatmul.bf16.vlgmr.msrb.gmra.mxu3 %v5508_v42 }
 0x18d   :  { %2791 = vmatpush.bf16.msrb.mxu3 %v4609_v36  ;;  %v5067_v47 = vld [vmem:[#allocation8 + $0x32c] sm:$0xf] }
 0x18f   :  { %2833 = vmatpush.bf16.msra.mxu2 %v4437_v49  ;;  %v4514_v49 = vld [vmem:[#allocation8 + $0x338] sm:$0xf0] }
 0x190   :  { %v4517_v50 = vor.u32 %v5067_v47, %v4514_v49 }
 0x191   :  { %2792 = vmatpush.bf16.msrb.mxu3 %v4593_v63 }
 0x193   :  { %2834 = vmatpush.bf16.msra.mxu2 %v4421_v54  ;;  %v4501_v54 = vor.u32 %v5063_v44, %v4498_v53  ;;  %v5120_v53 = vld [vmem:[#allocation11 + $0xd0] sm:$0xff] }
 0x195   :  { %2793 = vmatpush.bf16.msrb.mxu3 %v4577_v55 }
 0x197   :  { %2835 = vmatpush.bf16.msra.mxu2 %v4405_v22 }
 0x199   :  { %2794 = vmatpush.bf16.msrb.mxu3 %v4561_v48 }
 0x19b   :  { %v2657_v5 = vpop.f32.mrf.mxu0  ;;  %2836 = vmatpush.bf16.msra.mxu2 %v4389_v2  ;;  %v5098_v2 = vld [vmem:[#allocation11 + $0x20] sm:$0xff] }
 0x19c   :  { %2747 = vmatmul.bf16.vlgmr.msra.gmra.mxu3 %v5508_v42  ;;  %v2658_v23 = vadd.f32 %v2657_v5, %v2000_v60  ;;  %3127 = vmatpush.bf16.msrb.mxu0 %v5098_v2  ;;  %v5108_v5 = vld [vmem:[#allocation11 + $0x70] sm:$0xff] }
 0x19d   :  { %2795 = vmatpush.bf16.msrb.mxu3 %v4545_v3  ;;  %v5109_v3 = vld [vmem:[#allocation11 + $0x78] sm:$0xff]  ;;  %v5104_v60 = vld [vmem:[#allocation11 + $0x50] sm:$0xff] }
 0x19e   :  { %3137 = vmatpush.bf16.msrb.mxu1 %v5109_v3 }
 0x19f   :  { %2837 = vmatpush.bf16.msra.mxu2 %v4373_v52  ;;  %v5107_v52 = vld [vmem:[#allocation11 + $0x68] sm:$0xff] }
 0x1a1   :  { %2796 = vmatpush.bf16.msrb.mxu3 %v4529_v7 }
 0x1a2   :  { %2838 = vmatmul.bf16.vlgmr.msra.gmra.mxu2 %v5500_v25  ;;  %v2670_v24 = vpop.f32.mrf.mxu1  ;;  %v4581_v25 = vor.u32 %v5083_v29, %v4578_v43  ;;  %3138 = vmatpush.bf16.msrb.mxu1 %v5108_v5  ;;  %v5114_v29 = vld [vmem:[#allocation11 + $0xa0] sm:$0xff]  ;;  %v5113_v43 = vld [vmem:[#allocation11 + $0x98] sm:$0xff] }
 0x1a3   :  { %v2659_v12 = vpop.f32.mrf.mxu0  ;;  %v5516_v26 = vadd.f32 %v2670_v24, %v2658_v23  ;;  %3150 = vmatpush.bf16.msrb.mxu2 %v5117_v35  ;;  %v5115_v23 = vld [vmem:[#allocation11 + $0xa8] sm:$0xff] }
 0x1a4   :  { %v5094_v12 = vld [vmem:[#allocation11] sm:$0xff] }
 0x1a5   :  { %2797 = vmatpush.bf16.msrb.mxu3 %v4513_v9 }
 0x1a6   :  { %3139 = vmatpush.bf16.msrb.mxu1 %v5107_v52 }
 0x1a7   :  { %3151 = vmatpush.bf16.msrb.mxu2 %v5116_v10 }
 0x1a9   :  { %2798 = vmatpush.bf16.msrb.mxu3 %v4497_v15 }
 0x1aa   :  { %v2672_v20 = vpop.f32.mrf.mxu1  ;;  %3140 = vmatpush.bf16.msrb.mxu1 %v5106_v13 }
 0x1ab   :  { %3152 = vmatpush.bf16.msrb.mxu2 %v5115_v23  ;;  %v5111_v20 = vld [vmem:[#allocation11 + $0x88] sm:$0xff] }
 0x1ac   :  { %2799 = vmatmul.bf16.vlgmr.msrb.gmra.mxu3 %v5508_v42 }
 0x1ad   :  { %2843 = vmatpush.bf16.msra.mxu3 %v4613_v21 }
 0x1ae   :  { %3141 = vmatpush.bf16.msrb.mxu1 %v5105_v14 }
 0x1af   :  { %3153 = vmatpush.bf16.msrb.mxu2 %v5114_v29 }
 0x1b1   :  { %2844 = vmatpush.bf16.msra.mxu3 %v4597_v16  ;;  %v5102_v16 = vld [vmem:[#allocation11 + $0x40] sm:$0xff] }
 0x1b2   :  { %3142 = vmatpush.bf16.msrb.mxu1 %v5104_v60 }
 0x1b3   :  { %3154 = vmatpush.bf16.msrb.mxu2 %v5113_v43 }
 0x1b5   :  { %2845 = vmatpush.bf16.msra.mxu3 %v4581_v25  ;;  %v5112_v25 = vld [vmem:[#allocation11 + $0x90] sm:$0xff] }
 0x1b6   :  { %3143 = vmatpush.bf16.msrb.mxu1 %v5103_v17 }
 0x1b7   :  { %3155 = vmatpush.bf16.msrb.mxu2 %v5112_v25 }
 0x1b9   :  { %2846 = vmatpush.bf16.msra.mxu3 %v4565_v32 }
 0x1ba   :  { %3144 = vmatpush.bf16.msrb.mxu1 %v5102_v16 }
 0x1bb   :  { %v2709_v36 = vpop.f32.mrf.mxu0  ;;  %3156 = vmatpush.bf16.msrb.mxu2 %v5111_v20 }
 0x1bc   :  { %v2710_v58 = vadd.f32 %v2709_v36, %v2001_v34  ;;  %v2722_v37 = vpop.f32.mrf.mxu1  ;;  %v5125_v36 = vld [vmem:[#allocation11 + $0xf8] sm:$0xff] }
 0x1bd   :  { %2847 = vmatpush.bf16.msra.mxu3 %v4549_v41  ;;  %v5110_v41 = vld [vmem:[#allocation11 + $0x80] sm:$0xff] }
 0x1be   :  { %v5520_v63 = vadd.f32 %v2722_v37, %v2710_v58  ;;  %v5122_v37 = vld [vmem:[#allocation11 + $0xe0] sm:$0xff] }
 0x1bf   :  { %3157 = vmatpush.bf16.msrb.mxu2 %v5110_v41 }
 0x1c1   :  { %2848 = vmatpush.bf16.msra.mxu3 %v4533_v45  ;;  %v5123_v45 = vld [vmem:[#allocation11 + $0xe8] sm:$0xff] }
 0x1c3   :  { %v2711_v51 = vpop.f32.mrf.mxu0 }
 0x1c4   :  { %v2724_v55 = vpop.f32.mrf.mxu1 }
 0x1c5   :  { %2849 = vmatpush.bf16.msra.mxu3 %v4517_v50  ;;  %v5121_v50 = vld [vmem:[#allocation11 + $0xd8] sm:$0xff] }
 0x1c9   :  { %2850 = vmatpush.bf16.msra.mxu3 %v4501_v54 }
 0x1cc   :  { %2851 = vmatmul.bf16.vlgmr.msra.gmra.mxu3 %v5508_v42  ;;  %v5097_v42 = vld [vmem:[#allocation11 + $0x18] sm:$0xff] }
 0x1cd   :  { %3128 = vmatpush.bf16.msrb.mxu0 %v5097_v42  ;;  %3163 = vmatpush.bf16.msrb.mxu3 %v5125_v36 }
 0x1d1   :  { %3129 = vmatpush.bf16.msrb.mxu0 %v5096_v4  ;;  %3164 = vmatpush.bf16.msrb.mxu3 %v5124_v39 }
 0x1d5   :  { %3130 = vmatpush.bf16.msrb.mxu0 %v5095_v6  ;;  %3165 = vmatpush.bf16.msrb.mxu3 %v5123_v45 }
 0x1d9   :  { %3131 = vmatpush.bf16.msrb.mxu0 %v5094_v12  ;;  %3166 = vmatpush.bf16.msrb.mxu3 %v5122_v37 }
 0x1db   :  { %v2761_v57 = vpop.f32.mrf.mxu0 }
 0x1dc   :  { %v2762_v61 = vadd.f32 %v2761_v57, %v2002_v56  ;;  %v2774_v22 = vpop.f32.mrf.mxu1  ;;  %v5119_v56 = vld [vmem:[#allocation11 + $0xc8] sm:$0xff] }
 0x1dd   :  { %3167 = vmatpush.bf16.msrb.mxu3 %v5121_v50 }
 0x1de   :  { %v5524_v48 = vadd.f32 %v2774_v22, %v2762_v61  ;;  %v5118_v61 = vld [vmem:[#allocation11 + $0xc0] sm:$0xff] }
 0x1e1   :  { %3168 = vmatpush.bf16.msrb.mxu3 %v5120_v53 }
 0x1e3   :  { %v2763_v19 = vpop.f32.mrf.mxu0 }
 0x1e4   :  { %v2776_v1 = vpop.f32.mrf.mxu1 }
 0x1e5   :  { %v2683_v28 = vpop.f32.mrf.mxu2  ;;  %3169 = vmatpush.bf16.msrb.mxu3 %v5119_v56 }
 0x1e6   :  { %v2684_v31 = vadd.f32 %v2683_v28, %v5516_v26 }
 0x1e9   :  { %3170 = vmatpush.bf16.msrb.mxu3 %v5118_v61 }
 0x1ed   :  { %v2685_v62 = vpop.f32.mrf.mxu2 }
 0x1ee   :  { %v5137_v62 = vld [vmem:[%s5545_s6] ss:$0 sm:$0xff]  ;;  %s3193_s6 = sshll.u32 %s5546_s7, 4  ;;  %s3194_s6 = int_to_ptr.hbm [resolvable:$true] %s3193_s6 }
 0x1f5   :  { %v2735_v21 = vpop.f32.mrf.mxu2 }
 0x1f6   :  { %v2736_v26 = vadd.f32 %v2735_v21, %v5520_v63 }
 0x1fb   :  { %v2813_v7 = vpop.f32.mrf.mxu0 }
 0x1fc   :  { %v2814_v8 = vadd.f32 %v2813_v7, %v2003_v59  ;;  %v2826_v9 = vpop.f32.mrf.mxu1 }
 0x1fd   :  { %v2737_v24 = vpop.f32.mrf.mxu2 }
 0x1fe   :  { %v5527_v11 = vadd.f32 %v2826_v9, %v2814_v8 }
 0x203   :  { %v2815_v15 = vpop.f32.mrf.mxu0 }
 0x204   :  { %v2828_v27 = vpop.f32.mrf.mxu1 }
 0x205   :  { %v2787_v30 = vpop.f32.mrf.mxu2 }
 0x206   :  { %v2788_v57 = vadd.f32 %v2787_v30, %v5524_v48 }
 0x20d   :  { %v2789_v40 = vpop.f32.mrf.mxu2 }
 0x20f   :  { %v2696_v32 = vpop.f32.mrf.mxu3 }
 0x210   :  { %v2697_v33 = vadd.f32 %v2696_v32, %v2684_v31 }
 0x212   :  { %v2856_v34 = vmax.f32 %v2697_v33, 0.0 }
 0x214   :  { %v2860_v38 = vpack.c.bf16 %v2856_v34, %v2856_v34 }
 0x216   :  { %3132 = vmatmul.bf16.vlgmr.msrb.gmra.mxu0 %v2860_v38 }
 0x217   :  { %v2698_v58 = vpop.f32.mrf.mxu3 }
 0x21f   :  { %v2748_v47 = vpop.f32.mrf.mxu3 }
 0x220   :  { %v2749_v49 = vadd.f32 %v2748_v47, %v2736_v26 }
 0x222   :  { %v2857_v51 = vmax.f32 %v2749_v49, 0.0 }
 0x224   :  { %v2861_v44 = vpack.c.bf16 %v2857_v51, %v2857_v51 }
 0x225   :  { %v2839_v54 = vpop.f32.mrf.mxu2 }
 0x226   :  { %3145 = vmatmul.bf16.vlgmr.msrb.gmra.mxu1 %v2861_v44  ;;  %v2840_v1 = vadd.f32 %v2839_v54, %v5527_v11 }
 0x227   :  { %v2750_v55 = vpop.f32.mrf.mxu3 }
 0x22d   :  { %v2841_v46 = vpop.f32.mrf.mxu2 }
 0x22f   :  { %v2800_v22 = vpop.f32.mrf.mxu3 }
 0x230   :  { %v2801_v63 = vadd.f32 %v2800_v22, %v2788_v57 }
 0x232   :  { %v2858_v18 = vmax.f32 %v2801_v63, 0.0 }
 0x234   :  { %v2862_v19 = vpack.c.bf16 %v2858_v18, %v2858_v18 }
 0x236   :  { %3158 = vmatmul.bf16.vlgmr.msrb.gmra.mxu2 %v2862_v19 }
 0x237   :  { %v2802_v0 = vpop.f32.mrf.mxu3 }
 0x24f   :  { %v2852_v2 = vpop.f32.mrf.mxu3 }
 0x250   :  { %v2853_v3 = vadd.f32 %v2852_v2, %v2840_v1 }
 0x252   :  { %v2859_v42 = vmax.f32 %v2853_v3, 0.0 }
 0x254   :  { %v2863_v28 = vpack.c.bf16 %v2859_v42, %v2859_v42 }
 0x256   :  { %3171 = vmatmul.bf16.vlgmr.msrb.gmra.mxu3 %v2863_v28 }
 0x257   :  { %v2854_v4 = vpop.f32.mrf.mxu3 }
 0x293   :  { %v3133_v5 = vpop.f32.mrf.mxu0 }
 0x294   :  { %v3134_v8 = vadd.f32 %v5137_v62, %v3133_v5 }
 0x29b   :  { %v3135_v59 = vpop.f32.mrf.mxu0 }
 0x2a3   :  { %v3146_v48 = vpop.f32.mrf.mxu1 }
 0x2a4   :  { %v3147_v9 = vadd.f32 %v3146_v48, %v3134_v8 }
 0x2ab   :  { %v3148_v6 = vpop.f32.mrf.mxu1 }
 0x2b9   :  { %v3159_v52 = vpop.f32.mrf.mxu2 }
 0x2ba   :  { %v3160_v12 = vadd.f32 %v3159_v52, %v3147_v9 }
 0x2c1   :  { %v3161_v7 = vpop.f32.mrf.mxu2 }
 0x2d9   :  { %v3172_v13 = vpop.f32.mrf.mxu3 }
 0x2da   :  { %v3173_v11 = vadd.f32 %v3172_v13, %v3160_v12 }
 0x2dc   :  { %3176 = vmax.xlane.f32.xlu0 %v3173_v11 }
 0x2e1   :  { %v3174_v14 = vpop.f32.mrf.mxu3 }
 0x34f   :  { %v3177_v35 = vpop.xlane.xlu0 %3176 }
 0x350   :  { %v3178_v60 = vsub.f32 %v3173_v11, %v3177_v35 }
 0x352   :  { %v3179_v10 = vmul.f32 1.442695, %v3178_v60 }
 0x354   :  { %5138 = vpow2.f32 %v3179_v10 }
 0x35a   :  { %v5139_v15 = vpop.eup %5138 }
 0x35b   :  { %3181 = vadd.xlane.f32.xlu0 %v5139_v15 }
 0x3ce   :  { %v3182_v21 = vpop.xlane.xlu0 %3181 }
 0x3cf   :  { %5140 = vrcp.f32 %v3182_v21 }
 0x3d5   :  { %v5141_v27 = vpop.eup %5140 }
 0x3d6   :  { %v3184_v17 = vmul.f32 %v5141_v27, %v5139_v15 }
 0x3d8   :  { %3185 = vst [vmem:[#allocation13] sm:$0xff] %v3184_v17 }
 0x3d9   :  { %3196 = dma.vmem_to_hbm [thread:$0]  %s3192_s9, 128, %s3194_s6, [#allocation4]  }
 0x3da   :  { %5319 = dma.done.wait [#allocation4], 128  }
 0x3db   :  { %5320 = vsyncadd [#allocation4], 4294967168 }
 0x3dc   :  { %3201 = vsyncpa [#allocation3], 1 }
 0x3dd   :  { %3202 = vsyncpa [#allocation6], 1 }
 0x3de   :  { %3203 = vsyncpa [#allocation9], 1 }
 0x3df   :  { %3204 = vsyncpa [#allocation12], 1 }
 0x3e0   :  { %3205 = vsyncpa [#allocation4], 1 }

</bundles_post_ra>
